<compile_context>
chip_gen: v7x
topology: tpu7x:2x2x1
jax: 0.10.0
libtpu: 0.0.40
codegen_flags: <defaults>
</compile_context>

<pallas_src>
import functools
import math

import jax
import jax.numpy as jnp
from jax.experimental import pallas as pl
from jax.experimental.pallas import tpu as pltpu


# ---------------------------------------------------------------------------
# Tiling helpers
# ---------------------------------------------------------------------------

def _pick_bk(K):
    """Reduction tile: largest of {512,256,128} that divides K, else K."""
    for cand in (512, 256, 128):
        if K % cand == 0 and K > cand:
            return cand
    return K


def _pick_bn(N):
    """Output-feature tile: split N in half (>=2 parallel blocks for v7x's two
    TensorCores) when the half stays a multiple of 128 lanes."""
    half = N // 2
    if N >= 256 and N % 2 == 0 and half % 128 == 0:
        return half
    return N


def _pick_bm(M, cap=256):
    """Row tile: split M in half when the half stays a multiple of 8 sublanes."""
    half = M // 2
    if M >= 16 and M % 2 == 0 and half % 8 == 0 and half <= cap:
        return half
    return min(M, cap)


# ---------------------------------------------------------------------------
# Pallas kernels
# ---------------------------------------------------------------------------

def _linear_kernel(x_ref, w_ref, b_ref, o_ref, acc_ref, *, activation):
    """K-tiled y = act(x @ w + b); f32 accumulator, bf16 (or f32) output."""
    k = pl.program_id(2)

    @pl.when(k == 0)
    def _init():
        acc_ref[...] = jnp.zeros_like(acc_ref)

    w = w_ref[...]
    x = x_ref[...].astype(w.dtype)                 # bf16 MXU inputs
    acc_ref[...] += jnp.dot(x, w, preferred_element_type=jnp.float32)

    @pl.when(k == pl.num_programs(2) - 1)
    def _finalize():
        y = acc_ref[...] + b_ref[...].astype(jnp.float32)
        if activation == "gelu":
            # PyTorch F.gelu default is the exact (erf) form.  (On v6e the
            # tanh approximation would route through the EUP; kept exact for
            # parity with the reference.)
            y = jax.nn.gelu(y, approximate=False)
        o_ref[...] = y.astype(o_ref.dtype)


def linear(x, w, b, activation=None, out_dtype=jnp.bfloat16, bm=256):
    """y = act(x @ w + b).  x: (M, K), w: (K, N) bf16, b: (N,) f32."""
    M, K = x.shape
    Kw, N = w.shape
    assert K == Kw
    bm = min(bm, M)
    bn = _pick_bn(N)
    bk = _pick_bk(K)
    b2 = b.reshape(1, N).astype(jnp.float32)
    grid = (pl.cdiv(M, bm), N // bn, K // bk)
    return pl.pallas_call(
        functools.partial(_linear_kernel, activation=activation),
        out_shape=jax.ShapeDtypeStruct((M, N), out_dtype),
        grid_spec=pltpu.PrefetchScalarGridSpec(
            num_scalar_prefetch=0,
            grid=grid,
            in_specs=[
                pl.BlockSpec((bm, bk), lambda i, j, k: (i, k)),
                pl.BlockSpec((bk, bn), lambda i, j, k: (k, j)),
                pl.BlockSpec((1, bn), lambda i, j, k: (0, j)),
            ],
            out_specs=pl.BlockSpec((bm, bn), lambda i, j, k: (i, j)),
            scratch_shapes=[pltpu.VMEM((bm, bn), jnp.float32)],
        ),
        compiler_params=pltpu.CompilerParams(
            dimension_semantics=("parallel", "parallel", "arbitrary")),
    )(x, w, b2)


def _linear_res_ln_kernel(x_ref, w_ref, b_ref, r_ref, g_ref, bb_ref,
                          o_ref, acc_ref, *, eps):
    """K-tiled LayerNorm(res + x @ w + b); LN fused into the matmul epilogue."""
    k = pl.program_id(1)

    @pl.when(k == 0)
    def _init():
        acc_ref[...] = jnp.zeros_like(acc_ref)

    w = w_ref[...]
    x = x_ref[...].astype(w.dtype)
    acc_ref[...] += jnp.dot(x, w, preferred_element_type=jnp.float32)

    @pl.when(k == pl.num_programs(1) - 1)
    def _finalize():
        h = (acc_ref[...] + b_ref[...].astype(jnp.float32)
             + r_ref[...].astype(jnp.float32))
        mu = jnp.mean(h, axis=-1, keepdims=True)
        c = h - mu
        var = jnp.mean(c * c, axis=-1, keepdims=True)
        y = (c * jax.lax.rsqrt(var + eps)
             * g_ref[...].astype(jnp.float32) + bb_ref[...].astype(jnp.float32))
        o_ref[...] = y.astype(o_ref.dtype)


def linear_residual_layernorm(x, w, b, res, gamma, beta, eps=1e-5,
                              out_dtype=jnp.bfloat16):
    """LayerNorm(res + x @ w + b) over the last axis.  Full-N output block so
    the whole feature row is in VMEM for the LN reduction."""
    M, K = x.shape
    Kw, N = w.shape
    assert K == Kw and res.shape == (M, N)
    bm = _pick_bm(M)
    bk = _pick_bk(K)
    b2 = b.reshape(1, N).astype(jnp.float32)
    g2 = gamma.reshape(1, N).astype(jnp.float32)
    bb2 = beta.reshape(1, N).astype(jnp.float32)
    grid = (pl.cdiv(M, bm), K // bk)
    return pl.pallas_call(
        functools.partial(_linear_res_ln_kernel, eps=eps),
        out_shape=jax.ShapeDtypeStruct((M, N), out_dtype),
        grid_spec=pltpu.PrefetchScalarGridSpec(
            num_scalar_prefetch=0,
            grid=grid,
            in_specs=[
                pl.BlockSpec((bm, bk), lambda i, k: (i, k)),
                pl.BlockSpec((bk, N), lambda i, k: (k, 0)),
                pl.BlockSpec((1, N), lambda i, k: (0, 0)),
                pl.BlockSpec((bm, N), lambda i, k: (i, 0)),
                pl.BlockSpec((1, N), lambda i, k: (0, 0)),
                pl.BlockSpec((1, N), lambda i, k: (0, 0)),
            ],
            out_specs=pl.BlockSpec((bm, N), lambda i, k: (i, 0)),
            scratch_shapes=[pltpu.VMEM((bm, N), jnp.float32)],
        ),
        compiler_params=pltpu.CompilerParams(
            dimension_semantics=("parallel", "arbitrary")),
    )(x, w, b2, res, g2, bb2)


def _mha_kernel(qkv_ref, o_ref, *, num_heads, d_model):
    """Multi-row, all-head attention from a fused QKV slab.

    Softmax scale is pre-folded into the Q projection weights.  Each head's
    result is stored straight into its output column slice (no concat, keeps
    live vregs to one head's worth)."""
    dh = d_model // num_heads
    qkv = qkv_ref[...].astype(jnp.float32)          # (Bb, L, 3D)
    dn_qk = (((2,), (2,)), ((0,), (0,)))            # contract dh, batch rows
    dn_pv = (((2,), (1,)), ((0,), (0,)))
    for h in range(num_heads):                      # static unrolled head loop
        q = qkv[:, :, h * dh:(h + 1) * dh]
        k = qkv[:, :, d_model + h * dh:d_model + (h + 1) * dh]
        v = qkv[:, :, 2 * d_model + h * dh:2 * d_model + (h + 1) * dh]
        s = jax.lax.dot_general(q, k, dn_qk, preferred_element_type=jnp.float32)
        s = s - jnp.max(s, axis=-1, keepdims=True)
        p = jnp.exp(s)
        # approx reciprocal rides the EUP slot; use approx=False for strict parity.
        p = p * pl.reciprocal(jnp.sum(p, axis=-1, keepdims=True), approx=True)
        o_h = jax.lax.dot_general(p, v, dn_pv, preferred_element_type=jnp.float32)
        o_ref[:, :, h * dh:(h + 1) * dh] = o_h.astype(o_ref.dtype)


def mha_attention_fused(qkv, num_heads, d_model, out_dtype=jnp.bfloat16):
    """qkv: (B, L, 3*d_model) fused projection -> (B, L, d_model)."""
    B, L, threeD = qkv.shape
    assert threeD == 3 * d_model
    bb = B // 2 if (B % 2 == 0 and B >= 2) else B   # >=2 parallel steps for v7x
    grid = (B // bb,)
    return pl.pallas_call(
        functools.partial(_mha_kernel, num_heads=num_heads, d_model=d_model),
        out_shape=jax.ShapeDtypeStruct((B, L, d_model), out_dtype),
        grid_spec=pltpu.PrefetchScalarGridSpec(
            num_scalar_prefetch=0,
            grid=grid,
            in_specs=[pl.BlockSpec((bb, L, 3 * d_model), lambda i: (i, 0, 0))],
            out_specs=pl.BlockSpec((bb, L, d_model), lambda i: (i, 0, 0)),
        ),
        compiler_params=pltpu.CompilerParams(
            dimension_semantics=("parallel",)),
    )(qkv)


def _ln_kernel(x_ref, g_ref, b_ref, o_ref, *, eps):
    h = x_ref[...].astype(jnp.float32)
    mu = jnp.mean(h, axis=-1, keepdims=True)
    c = h - mu
    var = jnp.mean(c * c, axis=-1, keepdims=True)
    o_ref[...] = (c * jax.lax.rsqrt(var + eps)
                  * g_ref[...] + b_ref[...]).astype(o_ref.dtype)


def layernorm(x, gamma, beta, eps=1e-5, out_dtype=jnp.float32):
    """LayerNorm(x) over the last axis.  x: (M, D)."""
    M, D = x.shape
    bm = _pick_bm(M, cap=1024)
    g2 = gamma.reshape(1, D).astype(jnp.float32)
    b2 = beta.reshape(1, D).astype(jnp.float32)
    return pl.pallas_call(
        functools.partial(_ln_kernel, eps=eps),
        out_shape=jax.ShapeDtypeStruct((M, D), out_dtype),
        grid_spec=pltpu.PrefetchScalarGridSpec(
            num_scalar_prefetch=0,
            grid=(pl.cdiv(M, bm),),
            in_specs=[
                pl.BlockSpec((bm, D), lambda i: (i, 0)),
                pl.BlockSpec((1, D), lambda i: (0, 0)),
                pl.BlockSpec((1, D), lambda i: (0, 0)),
            ],
            out_specs=pl.BlockSpec((bm, D), lambda i: (i, 0)),
        ),
        compiler_params=pltpu.CompilerParams(dimension_semantics=("parallel",)),
    )(x, g2, b2)


# ---------------------------------------------------------------------------
# Model pieces built from the kernels (glue is plain JAX)
# ---------------------------------------------------------------------------

def transformer_encoder_layer(x, p, num_heads):
    """nn.TransformerEncoderLayer forward (batch_first, post-LN, eval/no-dropout)."""
    B, L, D = x.shape
    xf = x.reshape(B * L, D)

    qkv = linear(xf, p["w_qkv"], p["b_qkv"])                      # fused Q|K|V
    attn = mha_attention_fused(qkv.reshape(B, L, 3 * D), num_heads, D)
    # norm1(x + attn @ Wo + bo) -> fused into the Wo matmul epilogue
    h1 = linear_residual_layernorm(attn.reshape(B * L, D), p["wo"], p["bo"],
                                   xf, p["ln1_g"], p["ln1_b"])
    ff = linear(h1, p["w1"], p["b1"], activation="gelu")
    # norm2(h1 + ff @ W2 + b2) -> fused
    h2 = linear_residual_layernorm(ff, p["w2"], p["b2"],
                                   h1, p["ln2_g"], p["ln2_b"])
    return h2.reshape(B, L, D)


def clip_text_head(clip_out, eot_idx, enc_layers, ln_g, ln_b, num_heads):
    """clipTransEncoder (2 layers) + clip_ln + EOT-token gather of in2IN.text_process."""
    x = clip_out.astype(jnp.bfloat16)                # bf16 activation stream
    for p in enc_layers:
        x = transformer_encoder_layer(x, p, num_heads)
    B, L, D = x.shape
    x = layernorm(x.reshape(B * L, D), ln_g, ln_b).reshape(B, L, D)
    cond = x[jnp.arange(B), eot_idx]                 # (B, D)
    return cond


# ---------------------------------------------------------------------------
# Deterministic parameter construction
# ---------------------------------------------------------------------------

def make_encoder_layer_params(key, d_model, ff_size, num_heads,
                              wdtype=jnp.bfloat16):
    ks = jax.random.split(key, 8)
    s = 0.02
    scale = 1.0 / math.sqrt(d_model // num_heads)

    # Fused in-proj weight, columns ordered [Q | K | V]; the softmax scale is
    # folded into the Q columns/bias here (do the same when converting real
    # PyTorch in_proj_weight checkpoints).
    w_qkv = jax.random.normal(ks[0], (d_model, 3 * d_model), jnp.float32) * s
    b_qkv = jax.random.normal(ks[1], (3 * d_model,), jnp.float32) * s
    w_qkv = w_qkv.at[:, :d_model].multiply(scale)
    b_qkv = b_qkv.at[:d_model].multiply(scale)

    def w(k, shape):
        return (jax.random.normal(k, shape, jnp.float32) * s).astype(wdtype)

    return {
        "w_qkv": w_qkv.astype(wdtype),
        "b_qkv": b_qkv,
        "wo": w(ks[2], (d_model, d_model)),
        "bo": jax.random.normal(ks[3], (d_model,), jnp.float32) * s,
        "w1": w(ks[4], (d_model, ff_size)),
        "b1": jax.random.normal(ks[5], (ff_size,), jnp.float32) * s,
        "w2": w(ks[6], (ff_size, d_model)),
        "b2": jax.random.normal(ks[7], (d_model,), jnp.float32) * s,
        "ln1_g": jnp.ones((d_model,), jnp.float32),
        "ln1_b": jnp.zeros((d_model,), jnp.float32),
        "ln2_g": jnp.ones((d_model,), jnp.float32),
        "ln2_b": jnp.zeros((d_model,), jnp.float32),
    }


# ---------------------------------------------------------------------------
# Main
# ---------------------------------------------------------------------------

if __name__ == "__main__":
    # Small-but-consistent shapes: CLIP text width is fixed at 768 in the module;
    # batch, sequence, latent and motion dims are shrunk for the demo.
    B = 2             # batch
    L = 8             # text token length (stand-in for CLIP's 77)
    D_TEXT = 768      # text_emb_dim (fixed in the module)
    FF = 2048         # clip encoder feed-forward (fixed in the module)
    HEADS = 8         # nhead (fixed in the module)
    LATENT = 128      # cfg.LATENT_DIM (small)
    INPUT_FEATS = 64  # cfg.INPUT_DIM (small)
    T = 16            # motion frames

    root = jax.random.PRNGKey(0)
    k_enc, k_lnb, k_te, k_me, k_clip, k_x = jax.random.split(root, 6)

    # clipTransEncoder_interaction: 2 encoder layers + clip_ln_interaction
    enc_keys = jax.random.split(k_enc, 2)
    enc_layers = [make_encoder_layer_params(k, D_TEXT, FF, HEADS) for k in enc_keys]
    clip_ln_g = jnp.ones((D_TEXT,), jnp.float32)
    clip_ln_b = jax.random.normal(k_lnb, (D_TEXT,), jnp.float32) * 0.02

    # in2INDenoiser ('interaction' mode): text_embed / motion_embed linears
    te_w = (jax.random.normal(k_te, (D_TEXT, LATENT), jnp.float32) * 0.02).astype(jnp.bfloat16)
    te_b = jnp.zeros((LATENT,), jnp.float32)
    me_w = (jax.random.normal(k_me, (INPUT_FEATS, LATENT), jnp.float32) * 0.02).astype(jnp.bfloat16)
    me_b = jnp.zeros((LATENT,), jnp.float32)

    # Stand-in for frozen-CLIP output features for the 3 texts used in
    # 'interaction' mode (text, text_individual1, text_individual2).
    clip_out = jax.random.normal(k_clip, (3, B, L, D_TEXT), jnp.float32) * 0.5
    eot_idx = jnp.array([[L - 1, L - 3],
                         [L - 2, L - 1],
                         [L - 4, L - 2]], dtype=jnp.int32)   # text.argmax(-1) stand-in

    # ---- text_process x3, batched into ONE pass through the clip text head ----
    x_all = clip_out.reshape(3 * B, L, D_TEXT)               # (3B, L, 768)
    eot_all = eot_idx.reshape(3 * B)
    cond_all = clip_text_head(x_all, eot_all, enc_layers,
                              clip_ln_g, clip_ln_b, HEADS)    # (3B, 768) f32
    cond3 = cond_all.reshape(3, B, D_TEXT)
    cond = jnp.concatenate([cond3[0], cond3[1], cond3[2]], axis=-1)   # (B, 3*768)

    # ---- in2INDenoiser conditioning (text_embed on all 3 slices at once) ----
    emb_all = linear(cond_all, te_w, te_b, out_dtype=jnp.float32).reshape(3, B, LATENT)
    emb_inter, emb_ind1, emb_ind2 = emb_all[0], emb_all[1], emb_all[2]
    # TODO(synk): embed_timestep(timesteps) term (TimestepEmbedder undefined in source).

    # ---- motion_embed for both persons in one batched linear ----
    x_motion = jax.random.normal(k_x, (B, T, 2 * INPUT_FEATS), jnp.float32)
    x_a = x_motion[..., :INPUT_FEATS].reshape(B * T, INPUT_FEATS)
    x_b = x_motion[..., INPUT_FEATS:].reshape(B * T, INPUT_FEATS)
    x_ab = jnp.concatenate([x_a, x_b], axis=0)                # (2*B*T, INPUT_FEATS)
    m_emb = linear(x_ab, me_w, me_b, out_dtype=jnp.float32)
    a_emb = m_emb[:B * T].reshape(B, T, LATENT)               # motion_embed(x_a)
    b_emb = m_emb[B * T:].reshape(B, T, LATENT)               # motion_embed(x_b)
    # TODO(synk): sequence_pos_encoder, TransformerBlockDoubleCond stack, FinalLayer,
    #             and the MotionDiffusion loss / DDIM loop are undefined in the source.

    outputs = (cond, emb_inter, emb_ind1, emb_ind2, a_emb, b_emb)
    jax.block_until_ready(outputs)

    # Light sanity checks.
    assert cond.shape == (B, 3 * D_TEXT)
    assert emb_inter.shape == (B, LATENT)
    assert a_emb.shape == (B, T, LATENT)
    assert all(bool(jnp.all(jnp.isfinite(o))) for o in outputs)

    print("KERNEL_OK")
</pallas_src>

<mosaic_0001>
module attributes {stable_mosaic.version = 11 : i64} {
  func.func @_linear_kernel(%arg0: i32, %arg1: i32, %arg2: i32, %arg3: memref<48x256xbf16, #tpu.memory_space<vmem>>, %arg4: memref<256x1152xbf16, #tpu.memory_space<vmem>>, %arg5: memref<1x1152xf32, #tpu.memory_space<vmem>>, %arg6: memref<48x1152xbf16, #tpu.memory_space<vmem>>, %arg7: memref<48x1152xf32, #tpu.memory_space<vmem>>) attributes {dimension_semantics = [#tpu.dimension_semantics<parallel>, #tpu.dimension_semantics<parallel>, #tpu.dimension_semantics<arbitrary>], iteration_bounds = array<i64: 1, 2, 3>, scalar_prefetch = 0 : i64, scratch_operands = 1 : i64, tpu.core_type = #tpu.core_type<tc>, window_params = [{transform_indices = @transform_0, window_bounds = array<i64: 48, 256>}, {transform_indices = @transform_1, window_bounds = array<i64: 256, 1152>}, {transform_indices = @transform_2, window_bounds = array<i64: 1, 1152>}, {transform_indices = @transform_3, window_bounds = array<i64: 48, 1152>}]} {
    %c0_i32 = arith.constant 0 : i32
    %0 = arith.cmpi eq, %arg2, %c0_i32 : i32
    %1 = arith.extui %0 : i1 to i32
    %c0_i32_0 = arith.constant 0 : i32
    %2 = arith.cmpi ne, %1, %c0_i32_0 : i32
    scf.if %2 {
      %cst_9 = arith.constant 0.000000e+00 : f32
      %12 = vector.broadcast %cst_9 : f32 to vector<48x1152xf32>
      %c0_10 = arith.constant 0 : index
      %c0_11 = arith.constant 0 : index
      %13 = vector.load %arg7[%c0_10, %c0_11] : memref<48x1152xf32, #tpu.memory_space<vmem>>, vector<48x1152xf32>
      tpu.vector_store %arg7[%c0_10, %c0_11], %12 {strides = array<i32>} : memref<48x1152xf32, #tpu.memory_space<vmem>>, vector<48x1152xf32>,
    } else {
    }
    %c0 = arith.constant 0 : index
    %c0_1 = arith.constant 0 : index
    %3 = vector.load %arg4[%c0, %c0_1] : memref<256x1152xbf16, #tpu.memory_space<vmem>>, vector<256x1152xbf16>
    %c0_2 = arith.constant 0 : index
    %c0_3 = arith.constant 0 : index
    %4 = vector.load %arg3[%c0_2, %c0_3] : memref<48x256xbf16, #tpu.memory_space<vmem>>, vector<48x256xbf16>
    %c0_4 = arith.constant 0 : index
    %c0_5 = arith.constant 0 : index
    %5 = vector.load %arg7[%c0_4, %c0_5] : memref<48x1152xf32, #tpu.memory_space<vmem>>, vector<48x1152xf32>
    %cst = arith.constant dense<0.000000e+00> : vector<48x1152xf32>
    %6 = tpu.matmul %4, %3, %cst {dimension_numbers = #tpu.dot_dimension_numbers<[1], [0], [0], [1], [0, 0, 1, 1], [], []>} : vector<48x256xbf16>, vector<256x1152xbf16>, vector<48x1152xf32> -> vector<48x1152xf32>
    %7 = arith.addf %5, %6 : vector<48x1152xf32>
    %c0_6 = arith.constant 0 : index
    %c0_7 = arith.constant 0 : index
    %8 = vector.load %arg7[%c0_6, %c0_7] : memref<48x1152xf32, #tpu.memory_space<vmem>>, vector<48x1152xf32>
    tpu.vector_store %arg7[%c0_6, %c0_7], %7 {strides = array<i32>} : memref<48x1152xf32, #tpu.memory_space<vmem>>, vector<48x1152xf32>,
    %c2_i32 = arith.constant 2 : i32
    %9 = arith.cmpi eq, %arg2, %c2_i32 : i32
    %10 = arith.extui %9 : i1 to i32
    %c0_i32_8 = arith.constant 0 : i32
    %11 = arith.cmpi ne, %10, %c0_i32_8 : i32
    scf.if %11 {
      %c0_9 = arith.constant 0 : index
      %c0_10 = arith.constant 0 : index
      %12 = vector.load %arg7[%c0_9, %c0_10] : memref<48x1152xf32, #tpu.memory_space<vmem>>, vector<48x1152xf32>
      %c0_11 = arith.constant 0 : index
      %c0_12 = arith.constant 0 : index
      %13 = vector.load %arg5[%c0_11, %c0_12] : memref<1x1152xf32, #tpu.memory_space<vmem>>, vector<1x1152xf32>
      %14 = vector.broadcast %13 : vector<1x1152xf32> to vector<48x1152xf32>
      %15 = arith.addf %12, %14 : vector<48x1152xf32>
      %16 = arith.truncf %15 : vector<48x1152xf32> to vector<48x1152xbf16>
      %c0_13 = arith.constant 0 : index
      %c0_14 = arith.constant 0 : index
      %17 = vector.load %arg6[%c0_13, %c0_14] : memref<48x1152xbf16, #tpu.memory_space<vmem>>, vector<48x1152xbf16>
      tpu.vector_store %arg6[%c0_13, %c0_14], %16 {strides = array<i32>} : memref<48x1152xbf16, #tpu.memory_space<vmem>>, vector<48x1152xbf16>,
    } else {
    }
    return
  }
  func.func @transform_0(%arg0: i32, %arg1: i32, %arg2: i32) -> (i32, i32) {
    %c0_i32 = arith.constant 0 : i32
    return %arg0, %arg2 : i32, i32
  }
  func.func @transform_1(%arg0: i32, %arg1: i32, %arg2: i32) -> (i32, i32) {
    %c0_i32 = arith.constant 0 : i32
    return %arg2, %arg1 : i32, i32
  }
  func.func @transform_2(%arg0: i32, %arg1: i32, %arg2: i32) -> (i32, i32) {
    %c0_i32 = arith.constant 0 : i32
    %c0_i32_0 = arith.constant 0 : i32
    return %c0_i32, %arg1 : i32, i32
  }
  func.func @transform_3(%arg0: i32, %arg1: i32, %arg2: i32) -> (i32, i32) {
    %c0_i32 = arith.constant 0 : i32
    return %arg0, %arg1 : i32, i32
  }
}

</mosaic_0001>

<bundles_post_ra>
// kernel: tpu_custom_call.1
= control target key start
LH: loop header
LB: loop body
LE: loop exit
PB: predicated region body
PF: predicated region fallthrough
CT: control target
= control target key end

     0   :  { %s3925_s0 = inlined_call_operand.hbm [shape: bf16[48,768], index: 0, kind: input, shape index: {}]   ;;  %s3926_s1 = inlined_call_operand.hbm [shape: bf16[768,2304], index: 1, kind: input, shape index: {}]   ;;  %s3927_s2 = inlined_call_operand.hbm [shape: f32[1,2304], index: 2, kind: input, shape index: {}]   ;;  %s3928_s3 = inlined_call_operand.hbm [shape: bf16[48,2304], index: 3, kind: output, shape index: {}]  }
   0x1   :  { %3940 = sst [smem:[#allocation20_spill]] %s3925_s0 }
   0x2   :  { %3941 = sst [smem:[#allocation21_spill]] %s3926_s1 }
   0x3   :  { %3942 = sst [smem:[#allocation22_spill]] %s3928_s3 }
   0x4   :  { %8 = vsyncpa [#allocation4], 0 }
   0x5   :  { %10 = vsyncpa [#allocation4 + $0x1], 0 }
   0x6   :  { %11 = vsyncpa [#allocation7], 0 }
   0x7   :  { %13 = vsyncpa [#allocation7 + $0x1], 0 }
   0x8   :  { %14 = vsyncpa [#allocation5], 0 }
   0x9   :  { %16 = vsyncpa [#allocation5 + $0x1], 0  ;;  %s3210_s12 = smov 0   ;;  %s3212_s13 = smov 0  }
   0xa   :  { %s3214_s14 = smov 0   ;;  %s3216_s15 = smov 0  }
   0xb   :  { %s3218_s16 = smov 0   ;;  %s3220_s17 = smov 0  }
   0xc   :  { %s3222_s18 = smov 0   ;;  %s3224_s19 = smov 0  }
   0xd   :  { %s3226_s20 = smov 0   ;;  %s3228_s21 = smov 0  }
   0xe   :  { %s3230_s22 = smov 0   ;;  %s3232_s23 = smov 0  }
   0xf   :  { %s3234_s24 = smov 0   ;;  %s3236_s25 = smov 0  }
  0x10 LB: > { %3943 = sst [smem:[#allocation14_spill]] %s3158_s21  ;;  %s34_s26 = sadd.s32 1, %s3166_s23  ;;  %s3174_s25 = sphi %s3236_s25, %s22_s25   ;;  %s3170_s24 = sphi %s3234_s24, %s3984_s24   ;;  %s3166_s23 = sphi %s3232_s23, %s3996_s23   ;;  %s3162_s22 = sphi %s3230_s22, %s3982_s22   ;;  %s3158_s21 = sphi %s3228_s21, %s3995_s21   ;;  %s3154_s20 = sphi %s3226_s20, %s3994_s20   ;;  %s3150_s19 = sphi %s3224_s19, %s3993_s19   ;;  %s3146_s18 = sphi %s3222_s18, %s3992_s18   ;;  %s3142_s17 = sphi %s3220_s17, %s3991_s17   ;;  %s3138_s16 = sphi %s3218_s16, %s3990_s16   ;;  %s3134_s15 = sphi %s3216_s15, %s3989_s15   ;;  %s3130_s14 = sphi %s3214_s14, %s3988_s14   ;;  %s3126_s13 = sphi %s3212_s13, %s3987_s13   ;;  %s3122_s12 = sphi %s3210_s12, %s3986_s12  }
  0x11   : > { %3944 = sst [smem:[#allocation15_spill]] %s3162_s22  ;;  %p3932_p0 = scmp.eq.s32.totalorder %s3174_s25, 0 }
  0x12   : > { %3945 = sst [smem:[#allocation16_spill]] %s3166_s23  ;;  %p3282_p1 = scmp.ge.s32.totalorder %s34_s26, 3 }
  0x13   : > { %3946 = sst [smem:[#allocation17_spill]] %s3170_s24  ;;  %p85_p2 = scmp.ne.s32.totalorder %s3142_s17, %s3138_s16 }
  0x14   : > { %s3998_s26 = smov (%p3282_p1, %s34_s26), 0  ;;  %p3931_p5 = scmp.lt.s32.totalorder %s3174_s25, 6 }
  0x15   : > { %3948 = sst [smem:[#allocation18_spill]] %s3998_s26  ;;  %p87_p4 = por %p85_p2, %p3932_p0 }
  0x16   : > { %s3299_s29 = ssub.s32 %s3166_s23, %s3998_s26  ;;  %s193_s30 = sand.u32 1, %s3174_s25  }
  0x17   : > { %s195_s4 = sand.u32 1, %s3142_s17   ;;  %p3307_p7 = pnand %p3931_p5, %p87_p4 }
  0x18   : > { %s2560_s5 = smul.u32 1152, %s195_s4  ;;  %s3950_s1 = sld [smem:[#allocation21_spill]] }
  0x19   : > { %s199_s7 = smul.u32 9, %s3170_s24  ;;  %s3320_s4 = scalar_lea.sflag [#allocation7], %s193_s30 }
  0x1a   : > { %s2561_s8 = smul.u32 576, %s3166_s23  ;;  %s197_s9 = scalar_lea.vmem [#allocation6], %s2560_s5 }
  0x1b   : > { %s207_s10 = sshll.u32 %s197_s9, 4  ;;  %p2932_p9 = pneg %p3307_p7  ;;  %s3313_s10 = int_to_ptr.vmem [resolvable:$true] %s207_s10 }
  0x1c   : > { %s204_s11 = sadd.s32 %s2561_s8, %s199_s7 }
  0x1d   : > { %s2287_s28 = sshll.u32 %s204_s11, 6 }
  0x1e   : > { %s3318_s22 = scalar_lea.hbm %s3950_s1, %s2287_s28  ;;  %s2935_s3 = scalar_lea.hbm %s3950_s1, 110592 }
  0x1f   : > { %s2930_s21 = scalar_lea.hbm %s3318_s22, 18432  ;;  %p2936_p12 = scmp.lt.u32.totalorder %s3318_s22, %s3950_s1 }
  0x20   : > { %p2931_p8 = scmp.ne.s32.totalorder %s3318_s22, %s2930_s21  ;;  %p2937_p13 = scmp.lt.u32.totalorder %s2935_s3, %s2930_s21 }
  0x21   : > { %p2939_p4 = scmp.lt.u32.totalorder %s2930_s21, %s3318_s22 }
  0x22   : > { %p2933_p10 = pnand %p2932_p9, %p2931_p8  ;;  %p2938_p2 = por %p2937_p13, %p2936_p12 }
  0x24   : > { %p2934_p11 = pneg %p2933_p10  ;;  %p2940_p3 = por %p2939_p4, %p2938_p2 }
  0x26   : > { %p2941_p5 = pnand %p2940_p3, %p2934_p11 }
  0x28   : > { %2944 = shalt.err (!%p2941_p5)
}
  0x29   : > { %s2945_s30 = scalar_lea.vmem %s3313_s10, 18432  ;;  %s3176_s8 = smov [#allocation6]  }
  0x2a   : > { %p2946_p8 = scmp.ne.s32.totalorder %s3313_s10, %s2945_s30  ;;  %s2950_s9 = sshll.u32 %s3176_s8, 4  ;;  %s2951_s9 = int_to_ptr.vmem [resolvable:$false] %s2950_s9 }
  0x2b   : > { %s2952_s11 = scalar_lea.vmem %s2951_s9, 36864  ;;  %p2953_p6 = scmp.lt.s32.totalorder %s3313_s10, %s2951_s9 }
  0x2c   : > { %p2948_p10 = pnand %p2946_p8, %p2932_p9  ;;  %p2954_p12 = scmp.lt.s32.totalorder %s2952_s11, %s2945_s30 }
  0x2e   : > { %p2949_p0 = pneg %p2948_p10  ;;  %p2955_p13 = por %p2954_p12, %p2953_p6 }
  0x30   : > { %p2956_p2 = pnand %p2955_p13, %p2949_p0 }
  0x32   : > { %2959 = shalt.err (!%p2956_p2)
}
  0x33   : > { %s3177_s21 = smov 1152   ;;  %s3178_s5 = smov 576  }
  0x34   : > { %s3179_s7 = smov 36   ;;  %p2289_p0 = scmp.ge.s32.totalorder %s3174_s25, 1 }
  0x35   : > { %2581 = dma.hbm_to_vmem [thread:$0]  (!%p3307_p7), %s3318_s22, 18432, %s3313_s10, %s3320_s4, %s3177_s21, %s3178_s5, %s3179_s7  }
  0x36   : > { %p234_p3 = scmp.lt.s32.totalorder %s3174_s25, 7  ;;  %s50_s26 = sadd.s32 1, %s3154_s20 }
  0x37   : > { %p3952_p6 = scmp.eq.s32.totalorder %s3299_s29, 0  ;;  %p57_p9 = scmp.ne.s32.totalorder %s3154_s20, %s3150_s19 }
  0x38   : > { %p3350_p5 = pnand %p2289_p0, %p234_p3  ;;  %s169_s30 = sand.u32 1, %s3154_s20  }
  0x39   : > { %s3358_s28 = scalar_select %p3952_p6, %s3154_s20, %s50_s26  }
  0x3a   : > { %s3951_s3 = scalar_select %p3350_p5, 1, 0 }
  0x3b   : > { %s2476_s8 = sshll.u32 %s3166_s23, 7  ;;  %p3953_p4 = scmp.eq.s32.totalorder %s3174_s25, 0 }
  0x3c   : > { %s2559_s9 = smul.u32 48, %s169_s30  ;;  %s3954_s0 = sld [smem:[#allocation20_spill]] }
  0x3d   : > { %p59_p8 = por %p3953_p4, %p57_p9  ;;  %p3955_p7 = scmp.lt.s32.totalorder %s3174_s25, 6 }
  0x3e   : > { %s173_s21 = scalar_lea.vmem [#allocation3], %s2559_s9  ;;  %s3381_s7 = scalar_lea.sflag [#allocation4], %s169_s30 }
  0x3f   : > { %p3375_p10 = pnand %p3955_p7, %p59_p8  ;;  %s183_s5 = sshll.u32 %s173_s21, 4  ;;  %s3379_s5 = int_to_ptr.vmem [resolvable:$true] %s183_s5 }
  0x41   : > { %p2962_p13 = pneg %p3375_p10 }
  0x42   : > { %s3371_s22 = scalar_lea.hbm %s3954_s0, %s2476_s8  ;;  %s2965_s6 = scalar_lea.hbm %s3954_s0, 2304 }
  0x43   : > { %s2960_s26 = scalar_lea.hbm %s3371_s22, 768  ;;  %p2966_p3 = scmp.lt.u32.totalorder %s3371_s22, %s3954_s0 }
  0x44   : > { %p2961_p12 = scmp.ne.s32.totalorder %s3371_s22, %s2960_s26  ;;  %p2967_p6 = scmp.lt.u32.totalorder %s2965_s6, %s2960_s26 }
  0x45   : > { %p2969_p4 = scmp.lt.u32.totalorder %s2960_s26, %s3371_s22 }
  0x46   : > { %p2963_p2 = pnand %p2962_p13, %p2961_p12  ;;  %p2968_p9 = por %p2967_p6, %p2966_p3 }
  0x48   : > { %p2964_p0 = pneg %p2963_p2  ;;  %p2970_p8 = por %p2969_p4, %p2968_p9 }
  0x4a   : > { %p2971_p7 = pnand %p2970_p8, %p2964_p0 }
  0x4c   : > { %2974 = shalt.err (!%p2971_p7)
}
  0x4d   : > { %s2975_s30 = scalar_lea.vmem %s3379_s5, 768  ;;  %s3180_s9 = smov [#allocation3]  }
  0x4e   : > { %p2976_p12 = scmp.ne.s32.totalorder %s3379_s5, %s2975_s30  ;;  %s2980_s21 = sshll.u32 %s3180_s9, 4  ;;  %s2981_s21 = int_to_ptr.vmem [resolvable:$false] %s2980_s21 }
  0x4f   : > { %s2982_s1 = scalar_lea.vmem %s2981_s21, 1536  ;;  %p2983_p5 = scmp.lt.s32.totalorder %s3379_s5, %s2981_s21 }
  0x50   : > { %p2978_p2 = pnand %p2976_p12, %p2962_p13  ;;  %p2984_p3 = scmp.lt.s32.totalorder %s2982_s1, %s2975_s30 }
  0x52   : > { %p2979_p11 = pneg %p2978_p2  ;;  %p2985_p6 = por %p2984_p3, %p2983_p5 }
  0x54   : > { %p2986_p9 = pnand %p2985_p6, %p2979_p11 }
  0x56   : > { %2989 = shalt.err (!%p2986_p9)
}
  0x57   : > { %s3181_s23 = smov 384   ;;  %s3182_s26 = smov 128  }
  0x58   : > { %s3183_s8 = smov 8   ;;  %s3410_s11 = sadd.s32 4294967295, %s3174_s25  }
  0x59   : > { %2578 = dma.hbm_to_vmem [thread:$0]  (!%p3375_p10), %s3371_s22, 768, %s3379_s5, %s3381_s7, %s3181_s23, %s3182_s26, %s3183_s8  }
  0x5a   : > { %s2280_s6 = sadd.s32 4294967294, %s3174_s25   ;;  %s37_s30 = sadd.s32 1, %s3170_s24 }
  0x5b   : > { %p64_p5 = scmp.eq.s32.totalorder %s3410_s11, 0  ;;  %s4000_s30 = smov (!%p3282_p1, %s37_s30), %s3170_s24 }
  0x5c   : > { %p3957_p11 = scmp.ne.s32.totalorder %s3150_s19, %s3146_s18  ;;  %p3959_p0 = scmp.ne.s32.totalorder %s3138_s16, %s3134_s15 }
  0x5d   : > { %p39_p4 = scmp.ge.s32.totalorder %s4000_s30, 2  ;;  %s104_s10 = sadd.s32 1, %s3130_s14 }
  0x5e   : > { %p3421_p13 = por %p64_p5, %p3957_p11  ;;  %p3428_p10 = por %p3959_p0, %p64_p5 }
  0x5f   : > { %p111_p8 = scmp.ne.s32.totalorder %s3130_s14, %s3126_s13  ;;  %p117_p7 = scmp.ne.s32.totalorder %s3126_s13, %s3122_s12 }
  0x60   : > { %s3958_s9 = scalar_select %p3421_p13, 1, 0 }
  0x61   : > { %s3960_s22 = scalar_select %p3428_p10, 1, 0 }
  0x62   : > { %s4002_s30 = smov (%p39_p4, %s4000_s30), 0  ;;  %p3962_p1 = scmp.eq.s32.totalorder %s3174_s25, 0 }
  0x63   : > { %3961 = sst [smem:[#allocation19_spill]] %s4002_s30  ;;  %p3448_p2 = por %p117_p7, %p64_p5 }
  0x64   : > { %p3441_p12 = por %p111_p8, %p3962_p1  ;;  %s74_s27 = ssub.s32 %s3170_s24, %s4002_s30 }
  0x65   : > { %s3964_s18 = scalar_select %p3448_p2, 1, 0 }
  0x66   : > { %p143_p3 = scmp.eq.s32.totalorder %s3410_s11, 5  ;;  %s75_s5 = sor.u32 %s74_s27, %s3299_s29 }
  0x67   : > { %p102_p6 = scmp.eq.s32.totalorder %s74_s27, 0  ;;  %p76_p9 = scmp.eq.s32.totalorder %s75_s5, 0 }
  0x68   : > { %p3456_p11 = por %p143_p3, %p111_p8  ;;  %s3966_s1 = sadd.s32 1, %s3142_s17 }
  0x69   : > { %s3461_s21 = scalar_select %p102_p6, %s3130_s14, %s104_s10  }
  0x6a   : > { %s3965_s7 = scalar_select %p3456_p11, 1, 0 }
  0x6b   : > { %s3466_s23 = scalar_select %p76_p9, %s3142_s17, %s3966_s1  }
  0x6c   : > { %p149_p0 = scmp.eq.s32.totalorder %s2280_s6, 5  ;;  %s219_s26 = sand.u32 1, %s3130_s14  }
  0x6d   : > { %s2562_s8 = smul.u32 9, %s219_s26  ;;  %p3967_p5 = scmp.lt.s32.totalorder %s3174_s25, 6 }
  0x6e   : > { %p3480_p8 = por %p149_p0, %p117_p7  ;;  %s2477_s10 = smul.u32 144, %s3170_s24 }
  0x6f   : > { %p3473_p4 = pnand %p3967_p5, %p3441_p12  ;;  %s221_s15 = scalar_lea.vmem [#allocation8], %s2562_s8 }
  0x70   : > { %s3969_s29 = scalar_select %p3480_p8, 1, 0 }
  0x71   : > { %s3488_s6 = scalar_lea.hbm %s3927_s2, %s2477_s10  ;;  %s229_s1 = sshll.u32 %s221_s15, 4  ;;  %s230_s1 = int_to_ptr.vmem [resolvable:$true] %s229_s1 }
  0x72   : > { %s2990_s26 = scalar_lea.hbm %s3488_s6, 144  ;;  %p2992_p7 = pneg %p3473_p4 }
  0x73   : > { %p2991_p1 = scmp.ne.s32.totalorder %s3488_s6, %s2990_s26  ;;  %s2995_s10 = scalar_lea.hbm %s3927_s2, 288 }
  0x74   : > { %p2996_p6 = scmp.lt.u32.totalorder %s3488_s6, %s3927_s2  ;;  %p2997_p9 = scmp.lt.u32.totalorder %s2995_s10, %s2990_s26 }
  0x75   : > { %p2993_p12 = pnand %p2992_p7, %p2991_p1  ;;  %p2999_p5 = scmp.lt.u32.totalorder %s2990_s26, %s3488_s6 }
  0x76   : > { %p2998_p0 = por %p2997_p9, %p2996_p6 }
  0x77   : > { %p2994_p3 = pneg %p2993_p12 }
  0x78   : > { %p3000_p8 = por %p2999_p5, %p2998_p0 }
  0x7a   : > { %p3001_p11 = pnand %p3000_p8, %p2994_p3 }
  0x7c   : > { %3004 = shalt.err (!%p3001_p11)
}
  0x7d   : > { %s3005_s8 = scalar_lea.vmem %s230_s1, 144  ;;  %s3184_s15 = smov [#allocation8]  }
  0x7e   : > { %p3006_p2 = scmp.ne.s32.totalorder %s230_s1, %s3005_s8  ;;  %s3010_s24 = sshll.u32 %s3184_s15, 4  ;;  %s3011_s24 = int_to_ptr.vmem [resolvable:$false] %s3010_s24 }
  0x7f   : > { %s3012_s30 = scalar_lea.vmem %s3011_s24, 288  ;;  %p3013_p10 = scmp.lt.s32.totalorder %s230_s1, %s3011_s24 }
  0x80   : > { %p3008_p1 = pnand %p3006_p2, %p2992_p7  ;;  %p3014_p13 = scmp.lt.s32.totalorder %s3012_s30, %s3005_s8 }
  0x82   : > { %p3009_p12 = pneg %p3008_p1  ;;  %p3015_p6 = por %p3014_p13, %p3013_p10 }
  0x84   : > { %p3016_p9 = pnand %p3015_p6, %p3009_p12 }
  0x86   : > { %3019 = shalt.err (!%p3016_p9)
}
  0x87   : > { %2584 = dma.hbm_to_vmem [thread:$0]  (!%p3473_p4), %s3488_s6, 144, %s230_s1, %s3320_s4  }
  0x88   : > { %p3970_p11 = scmp.ne.s32.totalorder %s3951_s3, 0 }
  0x89   : > { %s240_s26 = sand.u32 (!%p3970_p11), 1, %s3150_s19   ;;  %p3971_p2 = scmp.ne.s32.totalorder (!%p3970_p11), %s3958_s9, 0 }
  0x8a   : > { %238 = sbr.rel (%p3970_p11) target bundleno = 624 (0x270), region = 32  ;;  %s241_s27 = scalar_lea.sflag (!%p3970_p11), [#allocation4], %s240_s26 }
  0x8b   : > { %s2563_s10 = smul.u32 (!%p3970_p11), 48, %s240_s26 }
  0x8d   : > { %s3515_s5 = scalar_lea.vmem (!%p3970_p11), [#allocation3], %s2563_s10 }
  0x91   : > { %3105 = dma.done.wait (%p3971_p2), %s241_s27, 768  }
  0x92   : > { %3107 = vsyncadd (%p3971_p2), %s241_s27, 4294966528  ;;  %s249_s0 = sand.u32 1, %s3410_s11   ;;  %s251_s4 = sand.u32 1, %s3138_s16  }
  0x93   : > { %s2564_s6 = smul.u32 1152, %s251_s4  ;;  %s250_s3 = scalar_lea.sflag [#allocation7], %s249_s0 }
  0x94   : > { %p3972_p13 = scmp.ne.s32.totalorder %s3960_s22, 0 }
  0x95   : > { %s3523_s1 = scalar_lea.vmem [#allocation6], %s2564_s6 }
  0x96   : > { %3109 = dma.done.wait (%p3972_p13), %s250_s3, 18432  }
  0x97   : > { %3111 = vsyncadd (%p3972_p13), %s250_s3, 4294948864  ;;  %s3530_s8 = sand.u32 1, %s3126_s13   ;;  %p3973_p10 = scmp.ne.s32.totalorder %s3964_s18, 0 }
  0x98   : > { %s2565_s9 = smul.u32 9, %s3530_s8 }
  0x9a   : > { %s3533_s15 = scalar_lea.vmem [#allocation8], %s2565_s9 }
  0x9b   : > { %3113 = dma.done.wait (%p3973_p10), %s250_s3, 144  }
  0x9c   : > { %3115 = vsyncadd (%p3973_p10), %s250_s3, 4294967152  ;;  %s2566_s11 = smul.u32 216, %s3530_s8  ;;  %s3974_s30 = sld [smem:[#allocation14_spill]] }
  0x9e   : > { %s3540_s24 = scalar_lea.vmem [#allocation9], %s2566_s11 }
  0xa2   : > { %p2290_p4 = scmp.ne.s32.totalorder %s3974_s30, 0 }
  0xa3   : > { %v3185_v0 = vmov (!%p2290_p4), 0.0  }
  0xa4   : > { %306 = sbr.rel (%p2290_p4) target bundleno = 191 (0xbf), region = 48  ;;  %307 = vst [vmem:[#allocation2] sm:$0xff] (!%p2290_p4), %v3185_v0  ;;  %308 = vst [vmem:[#allocation2 + $0x8] sm:$0xff] (!%p2290_p4), %v3185_v0 }
  0xa5   : > { %309 = vst [vmem:[#allocation2 + $0x10] sm:$0xff] (!%p2290_p4), %v3185_v0  ;;  %310 = vst [vmem:[#allocation2 + $0x18] sm:$0xff] (!%p2290_p4), %v3185_v0 }
  0xa6   : > { %311 = vst [vmem:[#allocation2 + $0x20] sm:$0xff] (!%p2290_p4), %v3185_v0  ;;  %312 = vst [vmem:[#allocation2 + $0x28] sm:$0xff] (!%p2290_p4), %v3185_v0 }
  0xa7   : > { %313 = vst [vmem:[#allocation2 + $0x30] sm:$0xff] (!%p2290_p4), %v3185_v0  ;;  %314 = vst [vmem:[#allocation2 + $0x38] sm:$0xff] (!%p2290_p4), %v3185_v0 }
  0xa8   : > { %315 = vst [vmem:[#allocation2 + $0x40] sm:$0xff] (!%p2290_p4), %v3185_v0  ;;  %316 = vst [vmem:[#allocation2 + $0x48] sm:$0xff] (!%p2290_p4), %v3185_v0 }
  0xa9   : > { %317 = vst [vmem:[#allocation2 + $0x50] sm:$0xff] (!%p2290_p4), %v3185_v0  ;;  %318 = vst [vmem:[#allocation2 + $0x58] sm:$0xff] (!%p2290_p4), %v3185_v0 }
  0xaa   : > { %319 = vst [vmem:[#allocation2 + $0x60] sm:$0xff] (!%p2290_p4), %v3185_v0  ;;  %320 = vst [vmem:[#allocation2 + $0x68] sm:$0xff] (!%p2290_p4), %v3185_v0 }
  0xab   : > { %321 = vst [vmem:[#allocation2 + $0x70] sm:$0xff] %v3185_v0  ;;  %322 = vst [vmem:[#allocation2 + $0x78] sm:$0xff] %v3185_v0 }
  0xac   : > { %323 = vst [vmem:[#allocation2 + $0x80] sm:$0xff] %v3185_v0  ;;  %324 = vst [vmem:[#allocation2 + $0x88] sm:$0xff] %v3185_v0 }
  0xad   : > { %325 = vst [vmem:[#allocation2 + $0x90] sm:$0xff] %v3185_v0  ;;  %326 = vst [vmem:[#allocation2 + $0x98] sm:$0xff] %v3185_v0 }
  0xae   : > { %327 = vst [vmem:[#allocation2 + $0xa0] sm:$0xff] %v3185_v0  ;;  %328 = vst [vmem:[#allocation2 + $0xa8] sm:$0xff] %v3185_v0 }
  0xaf   : > { %329 = vst [vmem:[#allocation2 + $0xb0] sm:$0xff] %v3185_v0  ;;  %330 = vst [vmem:[#allocation2 + $0xb8] sm:$0xff] %v3185_v0 }
  0xb0   : > { %331 = vst [vmem:[#allocation2 + $0xc0] sm:$0xff] %v3185_v0  ;;  %332 = vst [vmem:[#allocation2 + $0xc8] sm:$0xff] %v3185_v0 }
  0xb1   : > { %333 = vst [vmem:[#allocation2 + $0xd0] sm:$0xff] %v3185_v0  ;;  %334 = vst [vmem:[#allocation2 + $0xd8] sm:$0xff] %v3185_v0 }
  0xb2   : > { %335 = vst [vmem:[#allocation2 + $0xe0] sm:$0xff] %v3185_v0  ;;  %336 = vst [vmem:[#allocation2 + $0xe8] sm:$0xff] %v3185_v0 }
  0xb3   : > { %337 = vst [vmem:[#allocation2 + $0xf0] sm:$0xff] %v3185_v0  ;;  %338 = vst [vmem:[#allocation2 + $0xf8] sm:$0xff] %v3185_v0 }
  0xb4   : > { %339 = vst [vmem:[#allocation2 + $0x100] sm:$0xff] %v3185_v0  ;;  %340 = vst [vmem:[#allocation2 + $0x108] sm:$0xff] %v3185_v0 }
  0xb5   : > { %341 = vst [vmem:[#allocation2 + $0x110] sm:$0xff] %v3185_v0  ;;  %342 = vst [vmem:[#allocation2 + $0x118] sm:$0xff] %v3185_v0 }
  0xb6   : > { %343 = vst [vmem:[#allocation2 + $0x120] sm:$0xff] %v3185_v0  ;;  %344 = vst [vmem:[#allocation2 + $0x128] sm:$0xff] %v3185_v0 }
  0xb7   : > { %345 = vst [vmem:[#allocation2 + $0x130] sm:$0xff] %v3185_v0  ;;  %346 = vst [vmem:[#allocation2 + $0x138] sm:$0xff] %v3185_v0 }
  0xb8   : > { %347 = vst [vmem:[#allocation2 + $0x140] sm:$0xff] %v3185_v0  ;;  %348 = vst [vmem:[#allocation2 + $0x148] sm:$0xff] %v3185_v0 }
  0xb9   : > { %349 = vst [vmem:[#allocation2 + $0x150] sm:$0xff] %v3185_v0  ;;  %350 = vst [vmem:[#allocation2 + $0x158] sm:$0xff] %v3185_v0 }
  0xba   : > { %351 = vst [vmem:[#allocation2 + $0x160] sm:$0xff] %v3185_v0  ;;  %352 = vst [vmem:[#allocation2 + $0x168] sm:$0xff] %v3185_v0 }
  0xbb   : > { %353 = vst [vmem:[#allocation2 + $0x170] sm:$0xff] %v3185_v0  ;;  %354 = vst [vmem:[#allocation2 + $0x178] sm:$0xff] %v3185_v0 }
  0xbc   : > { %355 = vst [vmem:[#allocation2 + $0x180] sm:$0xff] %v3185_v0  ;;  %356 = vst [vmem:[#allocation2 + $0x188] sm:$0xff] %v3185_v0 }
  0xbd   : > { %357 = vst [vmem:[#allocation2 + $0x190] sm:$0xff] %v3185_v0  ;;  %358 = vst [vmem:[#allocation2 + $0x198] sm:$0xff] %v3185_v0 }
  0xbe   : > { %359 = vst [vmem:[#allocation2 + $0x1a0] sm:$0xff] %v3185_v0  ;;  %360 = vst [vmem:[#allocation2 + $0x1a8] sm:$0xff] %v3185_v0 }
  0xbf PF: > { %v2713_v1 = vld [vmem:[%s3523_s1 + $0xc] ss:$36 sps:$4 sm:$0xff]   ;;  %v2716_v3 = vld [vmem:[%s3523_s1 + $0x54] ss:$36 sps:$4 sm:$0xff]   ;;  %v2718_v4 = vld [vmem:[%s3523_s1 + $0x4] ss:$36 sps:$4 sm:$0xff]  }
  0xc0   : > { %v2715_v2 = vld [vmem:[%s3523_s1 + $0x8] ss:$36 sps:$4 sm:$0xff]   ;;  %1410 = vmatprep.subr.bf16.mxu1 %v2713_v1  ;;  %v2720_v5 = vld [vmem:[%s3523_s1 + $0x50] ss:$36 sps:$4 sm:$0xff]   ;;  %v2721_v6 = vld [vmem:[%s3523_s1] ss:$36 sps:$4 sm:$0xff]   ;;  %1347 = vmatprep.subr.bf16.mxu0 %v2718_v4 }
  0xc1   : > { %1411 = vmatpush1.bf16.msra.mxu1 %v2715_v2  ;;  %v2722_v7 = vld [vmem:[%s3523_s1 + $0x9c] ss:$36 sps:$4 sm:$0xff]   ;;  %v2724_v8 = vld [vmem:[%s3523_s1 + $0x4c] ss:$36 sps:$4 sm:$0xff]   ;;  %1348 = vmatpush1.bf16.msra.mxu0 %v2721_v6  ;;  %v2728_v11 = vld [vmem:[%s3523_s1 + $0xe4] ss:$36 sps:$4 sm:$0xff]  }
  0xc2   : > { %1412 = vmatprep.subr.bf16.mxu1 %v2716_v3  ;;  %v2727_v9 = vld [vmem:[%s3523_s1 + $0x48] ss:$36 sps:$4 sm:$0xff]   ;;  %1349 = vmatprep.subr.bf16.mxu0 %v2724_v8  ;;  %v2726_v10 = vld [vmem:[%s3523_s1 + $0x98] ss:$36 sps:$4 sm:$0xff]   ;;  %v2733_v13 = vld [vmem:[%s3523_s1 + $0x90] ss:$36 sps:$4 sm:$0xff]  }
  0xc3   : > { %v2730_v12 = vld [vmem:[%s3523_s1 + $0x94] ss:$36 sps:$4 sm:$0xff]   ;;  %v2732_v14 = vld [vmem:[%s3523_s1 + $0xe0] ss:$36 sps:$4 sm:$0xff]   ;;  %v2734_v16 = vld [vmem:[%s3523_s1 + $0x12c] ss:$36 sps:$4 sm:$0xff]  }
  0xc4   : > { %v2736_v15 = vld [vmem:[%s3523_s1 + $0xdc] ss:$36 sps:$4 sm:$0xff]   ;;  %v2738_v17 = vld [vmem:[%s3523_s1 + $0x128] ss:$36 sps:$4 sm:$0xff]   ;;  %v2740_v20 = vld [vmem:[%s3523_s1 + $0x174] ss:$36 sps:$4 sm:$0xff]  }
  0xc5   : > { %1413 = vmatpush1.bf16.msra.mxu1 %v2720_v5  ;;  %1350 = vmatpush1.bf16.msra.mxu0 %v2727_v9  ;;  %v2739_v18 = vld [vmem:[%s3523_s1 + $0xd8] ss:$36 sps:$4 sm:$0xff]   ;;  %v2742_v19 = vld [vmem:[%s3523_s1 + $0x124] ss:$36 sps:$4 sm:$0xff]   ;;  %v2744_v22 = vld [vmem:[%s3523_s1 + $0x170] ss:$36 sps:$4 sm:$0xff]  }
  0xc6   : > { %1414 = vmatprep.subr.bf16.mxu1 %v2722_v7  ;;  %1351 = vmatprep.subr.bf16.mxu0 %v2730_v12  ;;  %v2745_v21 = vld [vmem:[%s3523_s1 + $0x120] ss:$36 sps:$4 sm:$0xff]   ;;  %v2748_v23 = vld [vmem:[%s3523_s1 + $0x16c] ss:$36 sps:$4 sm:$0xff]   ;;  %v2750_v25 = vld [vmem:[%s3523_s1 + $0x1b8] ss:$36 sps:$4 sm:$0xff]  }
  0xc7   : > { %v2746_v24 = vld [vmem:[%s3523_s1 + $0x1bc] ss:$36 sps:$4 sm:$0xff]   ;;  %v2751_v26 = vld [vmem:[%s3523_s1 + $0x168] ss:$36 sps:$4 sm:$0xff]   ;;  %v2754_v27 = vld [vmem:[%s3523_s1 + $0x1b4] ss:$36 sps:$4 sm:$0xff]  }
  0xc8   : > { %v2752_v28 = vld [vmem:[%s3523_s1 + $0x204] ss:$36 sps:$4 sm:$0xff]   ;;  %v2757_v29 = vld [vmem:[%s3523_s1 + $0x1b0] ss:$36 sps:$4 sm:$0xff]   ;;  %v2760_v31 = vld [vmem:[%s3523_s1 + $0x1fc] ss:$36 sps:$4 sm:$0xff]  }
  0xc9   : > { %1415 = vmatpush1.bf16.msra.mxu1 %v2726_v10  ;;  %1352 = vmatpush1.bf16.msra.mxu0 %v2733_v13  ;;  %v2756_v30 = vld [vmem:[%s3523_s1 + $0x200] ss:$36 sps:$4 sm:$0xff]   ;;  %v2758_v32 = vld [vmem:[%s3523_s1 + $0x24c] ss:$36 sps:$4 sm:$0xff]   ;;  %v2763_v34 = vld [vmem:[%s3523_s1 + $0x1f8] ss:$36 sps:$4 sm:$0xff]  }
  0xca   : > { %1416 = vmatprep.subr.bf16.mxu1 %v2728_v11  ;;  %1353 = vmatprep.subr.bf16.mxu0 %v2736_v15  ;;  %v2762_v33 = vld [vmem:[%s3523_s1 + $0x248] ss:$36 sps:$4 sm:$0xff]   ;;  %v2764_v36 = vld [vmem:[%s3523_s1 + $0x294] ss:$36 sps:$4 sm:$0xff]   ;;  %v2769_v37 = vld [vmem:[%s3523_s1 + $0x240] ss:$36 sps:$4 sm:$0xff]  }
  0xcb   : > { %v2766_v35 = vld [vmem:[%s3523_s1 + $0x244] ss:$36 sps:$4 sm:$0xff]   ;;  %v2768_v38 = vld [vmem:[%s3523_s1 + $0x290] ss:$36 sps:$4 sm:$0xff]   ;;  %v2770_v40 = vld [vmem:[%s3523_s1 + $0x2dc] ss:$36 sps:$4 sm:$0xff]  }
  0xcc   : > { %v2772_v39 = vld [vmem:[%s3523_s1 + $0x28c] ss:$36 sps:$4 sm:$0xff]   ;;  %v2774_v41 = vld [vmem:[%s3523_s1 + $0x2d8] ss:$36 sps:$4 sm:$0xff]   ;;  %v2776_v44 = vld [vmem:[%s3523_s1 + $0x324] ss:$36 sps:$4 sm:$0xff]  }
  0xcd   : > { %1417 = vmatpush1.bf16.msra.mxu1 %v2732_v14  ;;  %1354 = vmatpush1.bf16.msra.mxu0 %v2739_v18  ;;  %v2775_v42 = vld [vmem:[%s3523_s1 + $0x288] ss:$36 sps:$4 sm:$0xff]   ;;  %v2778_v43 = vld [vmem:[%s3523_s1 + $0x2d4] ss:$36 sps:$4 sm:$0xff]   ;;  %v2780_v47 = vld [vmem:[%s3523_s1 + $0x320] ss:$36 sps:$4 sm:$0xff]  }
  0xce   : > { %1418 = vmatprep.subr.bf16.mxu1 %v2734_v16  ;;  %1355 = vmatprep.subr.bf16.mxu0 %v2742_v19  ;;  %v2781_v45 = vld [vmem:[%s3523_s1 + $0x2d0] ss:$36 sps:$4 sm:$0xff]   ;;  %v2784_v48 = vld [vmem:[%s3523_s1 + $0x31c] ss:$36 sps:$4 sm:$0xff]   ;;  %v2786_v51 = vld [vmem:[%s3523_s1 + $0x368] ss:$36 sps:$4 sm:$0xff]  }
  0xcf   : > { %v3589_v46 = vld [vmem:[%s3515_s5 + $0x4] ss:$8 sps:$4 sm:$0xff]   ;;  %v3613_v2 = vld [vmem:[%s3515_s5] ss:$8 sps:$4 sm:$0xff]   ;;  %v3631_v16 = vld [vmem:[%s3515_s5 + $0x14] ss:$8 sps:$4 sm:$0xff]  }
  0xd0   : > { %v2782_v49 = vld [vmem:[%s3523_s1 + $0x36c] ss:$36 sps:$4 sm:$0xff]   ;;  %1442 = vmatprep.mubr.bf16.mxu1 %v3589_v46  ;;  %1379 = vmatprep.mubr.bf16.mxu0 %v3589_v46  ;;  %v2787_v50 = vld [vmem:[%s3523_s1 + $0x318] ss:$36 sps:$4 sm:$0xff]   ;;  %v2790_v52 = vld [vmem:[%s3523_s1 + $0x364] ss:$36 sps:$4 sm:$0xff]  }
  0xd1   : > { %1419 = vmatpush1.bf16.msra.mxu1 %v2738_v17  ;;  %1356 = vmatpush1.bf16.msra.mxu0 %v2745_v21  ;;  %v2788_v53 = vld [vmem:[%s3523_s1 + $0x3b4] ss:$36 sps:$4 sm:$0xff]   ;;  %v2793_v54 = vld [vmem:[%s3523_s1 + $0x360] ss:$36 sps:$4 sm:$0xff]   ;;  %v2796_v56 = vld [vmem:[%s3523_s1 + $0x3ac] ss:$36 sps:$4 sm:$0xff]  }
  0xd2   : > { %1420 = vmatprep.subr.bf16.mxu1 %v2740_v20  ;;  %1357 = vmatprep.subr.bf16.mxu0 %v2748_v23  ;;  %v2792_v55 = vld [vmem:[%s3523_s1 + $0x3b0] ss:$36 sps:$4 sm:$0xff]   ;;  %v2794_v57 = vld [vmem:[%s3523_s1 + $0x3fc] ss:$36 sps:$4 sm:$0xff]   ;;  %v2799_v58 = vld [vmem:[%s3523_s1 + $0x3a8] ss:$36 sps:$4 sm:$0xff]  }
  0xd3   : > { %v2798_v59 = vld [vmem:[%s3523_s1 + $0x3f8] ss:$36 sps:$4 sm:$0xff]   ;;  %v2800_v61 = vld [vmem:[%s3523_s1 + $0x444] ss:$36 sps:$4 sm:$0xff]   ;;  %v2805_v62 = vld [vmem:[%s3523_s1 + $0x3f0] ss:$36 sps:$4 sm:$0xff]  }
  0xd4   : > { %v2802_v60 = vld [vmem:[%s3523_s1 + $0x3f4] ss:$36 sps:$4 sm:$0xff]   ;;  %v2804_v63 = vld [vmem:[%s3523_s1 + $0x440] ss:$36 sps:$4 sm:$0xff]   ;;  %v2823_v10 = vld [vmem:[%s3523_s1 + $0xac] ss:$36 sps:$4 sm:$0xff]  }
  0xd5   : > { %1421 = vmatpush1.bf16.msra.mxu1 %v2744_v22  ;;  %1358 = vmatpush1.bf16.msra.mxu0 %v2751_v26  ;;  %v2812_v0 = vld [vmem:[%s3523_s1 + $0x43c] ss:$36 sps:$4 sm:$0xff]   ;;  %v2820_v5 = vld [vmem:[%s3523_s1 + $0x14] ss:$36 sps:$4 sm:$0xff]   ;;  %v2817_v6 = vld [vmem:[%s3523_s1 + $0x64] ss:$36 sps:$4 sm:$0xff]  }
  0xd6   : > { %1422 = vmatprep.subr.bf16.mxu1 %v2746_v24  ;;  %1359 = vmatprep.subr.bf16.mxu0 %v2754_v27  ;;  %v2811_v1 = vld [vmem:[%s3523_s1 + $0x1c] ss:$36 sps:$4 sm:$0xff]   ;;  %v2818_v7 = vld [vmem:[%s3523_s1 + $0x10] ss:$36 sps:$4 sm:$0xff]   ;;  %v2821_v12 = vld [vmem:[%s3523_s1 + $0xa8] ss:$36 sps:$4 sm:$0xff]  }
  0xd7   : > { %v2814_v3 = vld [vmem:[%s3523_s1 + $0x438] ss:$36 sps:$4 sm:$0xff]   ;;  %v2815_v8 = vld [vmem:[%s3523_s1 + $0x60] ss:$36 sps:$4 sm:$0xff]   ;;  %v2827_v17 = vld [vmem:[%s3523_s1 + $0xf0] ss:$36 sps:$4 sm:$0xff]  }
  0xd8   : > { %v2809_v4 = vld [vmem:[%s3523_s1 + $0x18] ss:$36 sps:$4 sm:$0xff]   ;;  %v2832_v13 = vld [vmem:[%s3523_s1 + $0xa4] ss:$36 sps:$4 sm:$0xff]   ;;  %v2838_v18 = vld [vmem:[%s3523_s1 + $0xec] ss:$36 sps:$4 sm:$0xff]  }
  0xd9   : > { %1423 = vmatpush1.bf16.msra.mxu1 %v2750_v25  ;;  %1360 = vmatpush1.bf16.msra.mxu0 %v2757_v29  ;;  %v2826_v9 = vld [vmem:[%s3523_s1 + $0x5c] ss:$36 sps:$4 sm:$0xff]   ;;  %v2829_v14 = vld [vmem:[%s3523_s1 + $0xf4] ss:$36 sps:$4 sm:$0xff]   ;;  %v2836_v22 = vld [vmem:[%s3523_s1 + $0xe8] ss:$36 sps:$4 sm:$0xff]  }
  0xda   : > { %1424 = vmatprep.subr.bf16.mxu1 %v2752_v28  ;;  %1361 = vmatprep.subr.bf16.mxu0 %v2760_v31  ;;  %v2824_v11 = vld [vmem:[%s3523_s1 + $0x58] ss:$36 sps:$4 sm:$0xff]   ;;  %v2830_v15 = vld [vmem:[%s3523_s1 + $0xa0] ss:$36 sps:$4 sm:$0xff]   ;;  %v2842_v26 = vld [vmem:[%s3523_s1 + $0x130] ss:$36 sps:$4 sm:$0xff]  }
  0xdb   : > { %v3636_v19 = vld [vmem:[%s3515_s5 + $0x10] ss:$8 sps:$4 sm:$0xff]   ;;  %v3647_v25 = vld [vmem:[%s3515_s5 + $0x24] ss:$8 sps:$4 sm:$0xff]   ;;  %v3653_v27 = vld [vmem:[%s3515_s5 + $0x20] ss:$8 sps:$4 sm:$0xff]  }
  0xdc   : > { %v2835_v20 = vld [vmem:[%s3523_s1 + $0x13c] ss:$36 sps:$4 sm:$0xff]   ;;  %v2841_v23 = vld [vmem:[%s3523_s1 + $0x184] ss:$36 sps:$4 sm:$0xff]   ;;  %v2844_v24 = vld [vmem:[%s3523_s1 + $0x134] ss:$36 sps:$4 sm:$0xff]  }
  0xdd   : > { %1425 = vmatpush1.bf16.msra.mxu1 %v2756_v30  ;;  %1362 = vmatpush1.bf16.msra.mxu0 %v2763_v34  ;;  %v2833_v21 = vld [vmem:[%s3523_s1 + $0x138] ss:$36 sps:$4 sm:$0xff]   ;;  %v2839_v28 = vld [vmem:[%s3523_s1 + $0x180] ss:$36 sps:$4 sm:$0xff]   ;;  %v2847_v30 = vld [vmem:[%s3523_s1 + $0x1cc] ss:$36 sps:$4 sm:$0xff]  }
  0xde   : > { %1426 = vmatprep.subr.bf16.mxu1 %v2758_v32  ;;  %1363 = vmatprep.subr.bf16.mxu0 %v2766_v35  ;;  %v2850_v29 = vld [vmem:[%s3523_s1 + $0x17c] ss:$36 sps:$4 sm:$0xff]   ;;  %v2845_v32 = vld [vmem:[%s3523_s1 + $0x1c8] ss:$36 sps:$4 sm:$0xff]   ;;  %v2853_v34 = vld [vmem:[%s3523_s1 + $0x214] ss:$36 sps:$4 sm:$0xff]  }
  0xdf   : > { %v2848_v31 = vld [vmem:[%s3523_s1 + $0x178] ss:$36 sps:$4 sm:$0xff]   ;;  %v2851_v35 = vld [vmem:[%s3523_s1 + $0x210] ss:$36 sps:$4 sm:$0xff]   ;;  %s3975_s22 = sld [smem:[#allocation14_spill]] }
  0xe1   : > { %1427 = vmatpush1.bf16.msra.mxu1 %v2762_v33  ;;  %1364 = vmatpush1.bf16.msra.mxu0 %v2769_v37  ;;  %v2856_v33 = vld [vmem:[%s3523_s1 + $0x1c4] ss:$36 sps:$4 sm:$0xff]   ;;  %v2862_v37 = vld [vmem:[%s3523_s1 + $0x20c] ss:$36 sps:$4 sm:$0xff]  }
  0xe2   : > { %1428 = vmatprep.subr.bf16.mxu1 %v2764_v36  ;;  %1365 = vmatprep.subr.bf16.mxu0 %v2772_v39  ;;  %v2854_v36 = vld [vmem:[%s3523_s1 + $0x1c0] ss:$36 sps:$4 sm:$0xff]   ;;  %v2857_v39 = vld [vmem:[%s3523_s1 + $0x258] ss:$36 sps:$4 sm:$0xff]  }
  0xe5   : > { %1429 = vmatpush1.bf16.msra.mxu1 %v2768_v38  ;;  %1366 = vmatpush1.bf16.msra.mxu0 %v2775_v42  ;;  %v2859_v38 = vld [vmem:[%s3523_s1 + $0x25c] ss:$36 sps:$4 sm:$0xff]   ;;  %v2865_v42 = vld [vmem:[%s3523_s1 + $0x2a4] ss:$36 sps:$4 sm:$0xff]   ;;  %p2441_p8 = scmp.ne.s32.totalorder %s3975_s22, 2 }
  0xe6   : > { %1430 = vmatprep.subr.bf16.mxu1 %v2770_v40  ;;  %1367 = vmatprep.subr.bf16.mxu0 %v2778_v43  ;;  %v2860_v40 = vld [vmem:[%s3523_s1 + $0x208] ss:$36 sps:$4 sm:$0xff]   ;;  %v2863_v43 = vld [vmem:[%s3523_s1 + $0x2a0] ss:$36 sps:$4 sm:$0xff]  }
  0xe9   : > { %1431 = vmatpush1.bf16.msra.mxu1 %v2774_v41  ;;  %1368 = vmatpush1.bf16.msra.mxu0 %v2781_v45  ;;  %v2868_v41 = vld [vmem:[%s3523_s1 + $0x254] ss:$36 sps:$4 sm:$0xff]   ;;  %v2874_v45 = vld [vmem:[%s3523_s1 + $0x29c] ss:$36 sps:$4 sm:$0xff]  }
  0xea   : > { %1432 = vmatprep.subr.bf16.mxu1 %v2776_v44  ;;  %1369 = vmatprep.subr.bf16.mxu0 %v2784_v48  ;;  %v2866_v44 = vld [vmem:[%s3523_s1 + $0x250] ss:$36 sps:$4 sm:$0xff]   ;;  %v2869_v48 = vld [vmem:[%s3523_s1 + $0x2e8] ss:$36 sps:$4 sm:$0xff]  }
  0xed   : > { %1433 = vmatpush1.bf16.msra.mxu1 %v2780_v47  ;;  %1370 = vmatpush1.bf16.msra.mxu0 %v2787_v50  ;;  %v2871_v47 = vld [vmem:[%s3523_s1 + $0x2ec] ss:$36 sps:$4 sm:$0xff]   ;;  %v2882_v50 = vld [vmem:[%s3523_s1 + $0x2e4] ss:$36 sps:$4 sm:$0xff]  }
  0xee   : > { %1434 = vmatprep.subr.bf16.mxu1 %v2782_v49  ;;  %1371 = vmatprep.subr.bf16.mxu0 %v2790_v52  ;;  %v2872_v49 = vld [vmem:[%s3523_s1 + $0x298] ss:$36 sps:$4 sm:$0xff]   ;;  %v2880_v52 = vld [vmem:[%s3523_s1 + $0x2e0] ss:$36 sps:$4 sm:$0xff]  }
  0xf1   : > { %1435 = vmatpush1.bf16.msra.mxu1 %v2786_v51  ;;  %1372 = vmatpush1.bf16.msra.mxu0 %v2793_v54  ;;  %v2877_v51 = vld [vmem:[%s3523_s1 + $0x334] ss:$36 sps:$4 sm:$0xff]   ;;  %v2889_v54 = vld [vmem:[%s3523_s1 + $0x32c] ss:$36 sps:$4 sm:$0xff]  }
  0xf2   : > { %1436 = vmatprep.subr.bf16.mxu1 %v2788_v53  ;;  %1373 = vmatprep.subr.bf16.mxu0 %v2796_v56  ;;  %v2875_v53 = vld [vmem:[%s3523_s1 + $0x330] ss:$36 sps:$4 sm:$0xff]   ;;  %v2887_v56 = vld [vmem:[%s3523_s1 + $0x328] ss:$36 sps:$4 sm:$0xff]  }
  0xf5   : > { %1437 = vmatpush1.bf16.msra.mxu1 %v2792_v55  ;;  %1374 = vmatpush1.bf16.msra.mxu0 %v2799_v58  ;;  %v2886_v55 = vld [vmem:[%s3523_s1 + $0x37c] ss:$36 sps:$4 sm:$0xff]   ;;  %v2897_v58 = vld [vmem:[%s3523_s1 + $0x374] ss:$36 sps:$4 sm:$0xff]  }
  0xf6   : > { %1438 = vmatprep.subr.bf16.mxu1 %v2794_v57  ;;  %1375 = vmatprep.subr.bf16.mxu0 %v2802_v60  ;;  %v2884_v57 = vld [vmem:[%s3523_s1 + $0x378] ss:$36 sps:$4 sm:$0xff]   ;;  %v2895_v60 = vld [vmem:[%s3523_s1 + $0x370] ss:$36 sps:$4 sm:$0xff]  }
  0xf9   : > { %1439 = vmatpush1.bf16.msra.mxu1 %v2798_v59  ;;  %1376 = vmatpush1.bf16.msra.mxu0 %v2805_v62  ;;  %v2892_v59 = vld [vmem:[%s3523_s1 + $0x3c4] ss:$36 sps:$4 sm:$0xff]   ;;  %v2904_v62 = vld [vmem:[%s3523_s1 + $0x3bc] ss:$36 sps:$4 sm:$0xff]  }
  0xfa   : > { %1440 = vmatprep.subr.bf16.mxu1 %v2800_v61  ;;  %1377 = vmatprep.subr.bf16.mxu0 %v2812_v0  ;;  %v2890_v61 = vld [vmem:[%s3523_s1 + $0x3c0] ss:$36 sps:$4 sm:$0xff]   ;;  %v2902_v0 = vld [vmem:[%s3523_s1 + $0x3b8] ss:$36 sps:$4 sm:$0xff]  }
  0xfd   : > { %1441 = vmatpush1.bf16.msra.mxu1 %v2804_v63  ;;  %1378 = vmatpush1.bf16.msra.mxu0 %v2814_v3  ;;  %v2901_v63 = vld [vmem:[%s3523_s1 + $0x40c] ss:$36 sps:$4 sm:$0xff]   ;;  %v2910_v3 = vld [vmem:[%s3523_s1 + $0x404] ss:$36 sps:$4 sm:$0xff]  }
  0xfe   : > { %1536 = vmatprep.subr.bf16.mxu1 %v2811_v1  ;;  %1473 = vmatprep.subr.bf16.mxu0 %v2820_v5  ;;  %v2899_v1 = vld [vmem:[%s3523_s1 + $0x408] ss:$36 sps:$4 sm:$0xff]   ;;  %v2908_v5 = vld [vmem:[%s3523_s1 + $0x400] ss:$36 sps:$4 sm:$0xff]  }
 0x100   : > { %1443 = vmatmul.mubr.bf16.vlgmr.msra.gmra.mrb[0].mxu1 %v3613_v2  ;;  %1380 = vmatmul.mubr.bf16.vlgmr.msra.gmra.mrb[0].mxu0 %v3613_v2 }
 0x101   : > { %1537 = vmatpush1.bf16.msra.mxu1 %v2809_v4  ;;  %1474 = vmatpush1.bf16.msra.mxu0 %v2818_v7  ;;  %v2907_v4 = vld [vmem:[%s3523_s1 + $0x454] ss:$36 sps:$4 sm:$0xff]   ;;  %v2914_v7 = vld [vmem:[%s3523_s1 + $0x44c] ss:$36 sps:$4 sm:$0xff]  }
 0x102   : > { %1538 = vmatprep.subr.bf16.mxu1 %v2817_v6  ;;  %1475 = vmatprep.subr.bf16.mxu0 %v2826_v9  ;;  %v2905_v6 = vld [vmem:[%s3523_s1 + $0x450] ss:$36 sps:$4 sm:$0xff]   ;;  %v2912_v9 = vld [vmem:[%s3523_s1 + $0x448] ss:$36 sps:$4 sm:$0xff]  }
 0x103   : > { %1452 = vmatprep.mubr.bf16.mxu1 %v3631_v16  ;;  %1389 = vmatprep.mubr.bf16.mxu0 %v3631_v16 }
 0x105   : > { %1539 = vmatpush1.bf16.msra.mxu1 %v2815_v8  ;;  %1476 = vmatpush1.bf16.msra.mxu0 %v2824_v11  ;;  %v2911_v8 = vld [vmem:[%s3523_s1 + $0x260] ss:$36 sps:$4 sm:$0xff]   ;;  %v2916_v11 = vld [vmem:[%s3523_s1 + $0x2a8] ss:$36 sps:$4 sm:$0xff]  }
 0x106   : > { %1540 = vmatprep.subr.bf16.mxu1 %v2823_v10  ;;  %1477 = vmatprep.subr.bf16.mxu0 %v2832_v13  ;;  %v2915_v10 = vld [vmem:[%s3523_s1 + $0x20] ss:$36 sps:$4 sm:$0xff]   ;;  %v2918_v13 = vld [vmem:[%s3523_s1 + $0x2f0] ss:$36 sps:$4 sm:$0xff]  }
 0x108   : > { %1453 = vmatmul.mubr.bf16.gmra.mrb[4].mxu1 %v3636_v19  ;;  %1390 = vmatmul.mubr.bf16.gmra.mrb[4].mxu0 %v3636_v19 }
 0x109   : > { %1541 = vmatpush1.bf16.msra.mxu1 %v2821_v12  ;;  %1478 = vmatpush1.bf16.msra.mxu0 %v2830_v15  ;;  %v2917_v12 = vld [vmem:[%s3523_s1 + $0x68] ss:$36 sps:$4 sm:$0xff]   ;;  %v2920_v15 = vld [vmem:[%s3523_s1 + $0x338] ss:$36 sps:$4 sm:$0xff]  }
 0x10a   : > { %1542 = vmatprep.subr.bf16.mxu1 %v2829_v14  ;;  %1479 = vmatprep.subr.bf16.mxu0 %v2838_v18  ;;  %v2919_v14 = vld [vmem:[%s3523_s1 + $0xb0] ss:$36 sps:$4 sm:$0xff]   ;;  %v2922_v18 = vld [vmem:[%s3523_s1 + $0x380] ss:$36 sps:$4 sm:$0xff]  }
 0x10b   : > { %1462 = vmatprep.mubr.bf16.mxu1 %v3647_v25  ;;  %1399 = vmatprep.mubr.bf16.mxu0 %v3647_v25 }
 0x10d   : > { %1543 = vmatpush1.bf16.msra.mxu1 %v2827_v17  ;;  %1480 = vmatpush1.bf16.msra.mxu0 %v2836_v22  ;;  %v2921_v17 = vld [vmem:[%s3523_s1 + $0xf8] ss:$36 sps:$4 sm:$0xff]   ;;  %v2925_v22 = vld [vmem:[%s3523_s1 + $0x188] ss:$36 sps:$4 sm:$0xff]  }
 0x10e   : > { %1544 = vmatprep.subr.bf16.mxu1 %v2835_v20  ;;  %1481 = vmatprep.subr.bf16.mxu0 %v2844_v24  ;;  %v2923_v20 = vld [vmem:[%s3523_s1 + $0x140] ss:$36 sps:$4 sm:$0xff]   ;;  %v2927_v24 = vld [vmem:[%s3523_s1 + $0x1d0] ss:$36 sps:$4 sm:$0xff]  }
 0x110   : > { %1463 = vmatmul.mubr.bf16.gmra.mrb[8].mxu1 %v3653_v27  ;;  %1400 = vmatmul.mubr.bf16.gmra.mrb[8].mxu0 %v3653_v27 }
 0x111   : > { %1545 = vmatpush1.bf16.msra.mxu1 %v2833_v21  ;;  %1482 = vmatpush1.bf16.msra.mxu0 %v2842_v26  ;;  %v2924_v21 = vld [vmem:[%s3523_s1 + $0x3c8] ss:$36 sps:$4 sm:$0xff]   ;;  %v2928_v26 = vld [vmem:[%s3523_s1 + $0x458] ss:$36 sps:$4 sm:$0xff]  }
 0x112   : > { %1546 = vmatprep.subr.bf16.mxu1 %v2841_v23  ;;  %1568 = vmatprep.mubr.bf16.mxu1 %v3589_v46  ;;  %v2926_v23 = vld [vmem:[%s3523_s1 + $0x410] ss:$36 sps:$4 sm:$0xff]  }
 0x113   : > { %1483 = vmatprep.subr.bf16.mxu0 %v2850_v29  ;;  %1505 = vmatprep.mubr.bf16.mxu0 %v3589_v46 }
 0x115   : > { %1547 = vmatpush1.bf16.msra.mxu1 %v2839_v28  ;;  %1484 = vmatpush1.bf16.msra.mxu0 %v2848_v31  ;;  %v2929_v28 = vld [vmem:[%s3523_s1 + $0x218] ss:$36 sps:$4 sm:$0xff]  }
 0x116   : > { %1548 = vmatprep.subr.bf16.mxu1 %v2847_v30  ;;  %1485 = vmatprep.subr.bf16.mxu0 %v2856_v33  ;;  %v538_v30 = vld [vmem:[#allocation2 + $0x58] sm:$0xff]  ;;  %v539_v33 = vld [vmem:[#allocation2 + $0x60] sm:$0xff] }
 0x119   : > { %1549 = vmatpush1.bf16.msra.mxu1 %v2845_v32  ;;  %1486 = vmatpush1.bf16.msra.mxu0 %v2854_v36 }
 0x11a   : > { %1550 = vmatprep.subr.bf16.mxu1 %v2853_v34  ;;  %1487 = vmatprep.subr.bf16.mxu0 %v2862_v37  ;;  %v527_v34 = vld [vmem:[#allocation2] sm:$0xff]  ;;  %v528_v37 = vld [vmem:[#allocation2 + $0x8] sm:$0xff] }
 0x11d   : > { %1551 = vmatpush1.bf16.msra.mxu1 %v2851_v35  ;;  %1488 = vmatpush1.bf16.msra.mxu0 %v2860_v40 }
 0x11e   : > { %1552 = vmatprep.subr.bf16.mxu1 %v2859_v38  ;;  %1489 = vmatprep.subr.bf16.mxu0 %v2868_v41  ;;  %v537_v41 = vld [vmem:[#allocation2 + $0x50] sm:$0xff] }
 0x121   : > { %1553 = vmatpush1.bf16.msra.mxu1 %v2857_v39  ;;  %1490 = vmatpush1.bf16.msra.mxu0 %v2866_v44 }
 0x122   : > { %1554 = vmatprep.subr.bf16.mxu1 %v2865_v42  ;;  %1491 = vmatprep.subr.bf16.mxu0 %v2874_v45 }
 0x125   : > { %1555 = vmatpush1.bf16.msra.mxu1 %v2863_v43  ;;  %1492 = vmatpush1.bf16.msra.mxu0 %v2872_v49  ;;  %v548_v49 = vld [vmem:[#allocation2 + $0xa8] sm:$0xff] }
 0x126   : > { %1556 = vmatprep.subr.bf16.mxu1 %v2871_v47  ;;  %1493 = vmatprep.subr.bf16.mxu0 %v2882_v50 }
 0x129   : > { %1557 = vmatpush1.bf16.msra.mxu1 %v2869_v48  ;;  %1494 = vmatpush1.bf16.msra.mxu0 %v2880_v52  ;;  %v547_v48 = vld [vmem:[#allocation2 + $0xa0] sm:$0xff] }
 0x12a   : > { %1558 = vmatprep.subr.bf16.mxu1 %v2877_v51  ;;  %1495 = vmatprep.subr.bf16.mxu0 %v2889_v54  ;;  %v556_v51 = vld [vmem:[#allocation2 + $0xe8] sm:$0xff]  ;;  %v557_v54 = vld [vmem:[#allocation2 + $0xf0] sm:$0xff] }
 0x12d   : > { %1559 = vmatpush1.bf16.msra.mxu1 %v2875_v53  ;;  %1496 = vmatpush1.bf16.msra.mxu0 %v2887_v56 }
 0x12e   : > { %1560 = vmatprep.subr.bf16.mxu1 %v2886_v55  ;;  %1497 = vmatprep.subr.bf16.mxu0 %v2897_v58  ;;  %v545_v55 = vld [vmem:[#allocation2 + $0x90] sm:$0xff]  ;;  %v546_v58 = vld [vmem:[#allocation2 + $0x98] sm:$0xff] }
 0x131   : > { %1561 = vmatpush1.bf16.msra.mxu1 %v2884_v57  ;;  %1498 = vmatpush1.bf16.msra.mxu0 %v2895_v60 }
 0x132   : > { %1562 = vmatprep.subr.bf16.mxu1 %v2892_v59  ;;  %1499 = vmatprep.subr.bf16.mxu0 %v2904_v62  ;;  %v554_v62 = vld [vmem:[#allocation2 + $0xd8] sm:$0xff] }
 0x135   : > { %1563 = vmatpush1.bf16.msra.mxu1 %v2890_v61  ;;  %1500 = vmatpush1.bf16.msra.mxu0 %v2902_v0 }
 0x136   : > { %1564 = vmatprep.subr.bf16.mxu1 %v2901_v63  ;;  %1501 = vmatprep.subr.bf16.mxu0 %v2910_v3  ;;  %v555_v3 = vld [vmem:[#allocation2 + $0xe0] sm:$0xff] }
 0x139   : > { %1565 = vmatpush1.bf16.msra.mxu1 %v2899_v1  ;;  %1502 = vmatpush1.bf16.msra.mxu0 %v2908_v5 }
 0x13a   : > { %1566 = vmatprep.subr.bf16.mxu1 %v2907_v4  ;;  %1503 = vmatprep.subr.bf16.mxu0 %v2914_v7 }
 0x13d   : > { %1567 = vmatpush1.bf16.msra.mxu1 %v2905_v6  ;;  %1504 = vmatpush1.bf16.msra.mxu0 %v2912_v9  ;;  %v565_v6 = vld [vmem:[#allocation2 + $0x130] sm:$0xff]  ;;  %v566_v9 = vld [vmem:[#allocation2 + $0x138] sm:$0xff] }
 0x13e   : > { %2543 = vmatprep.subr.bf16.mxu1 %v2911_v8  ;;  %2509 = vmatprep.subr.bf16.mxu0 %v2911_v8 }
 0x140   : > { %1569 = vmatmul.mubr.bf16.vlgmr.msra.gmra.mrb[12].mxu1 %v3613_v2  ;;  %1506 = vmatmul.mubr.bf16.vlgmr.msra.gmra.mrb[12].mxu0 %v3613_v2 }
 0x141   : > { %2551 = vmatpush3.bf16.msra.mxu1 %v2915_v10  ;;  %1578 = vmatprep.mubr.bf16.mxu1 %v3631_v16 }
 0x142   : > { %2544 = vmatprep.subr.bf16.mxu1 %v2916_v11  ;;  %2510 = vmatpush3.bf16.msra.mxu0 %v2915_v10 }
 0x143   : > { %1515 = vmatprep.mubr.bf16.mxu0 %v3631_v16  ;;  %2511 = vmatprep.subr.bf16.mxu0 %v2916_v11 }
 0x145   : > { %2552 = vmatpush3.bf16.msra.mxu1 %v2917_v12 }
 0x146   : > { %2545 = vmatprep.subr.bf16.mxu1 %v2918_v13  ;;  %2512 = vmatpush3.bf16.msra.mxu0 %v2917_v12  ;;  %v574_v12 = vld [vmem:[#allocation2 + $0x178] sm:$0xff] }
 0x147   : > { %2513 = vmatprep.subr.bf16.mxu0 %v2918_v13 }
 0x148   : > { %1579 = vmatmul.mubr.bf16.gmra.mrb[16].mxu1 %v3636_v19  ;;  %1516 = vmatmul.mubr.bf16.gmra.mrb[16].mxu0 %v3636_v19 }
 0x149   : > { %2553 = vmatpush3.bf16.msra.mxu1 %v2919_v14  ;;  %1588 = vmatprep.mubr.bf16.mxu1 %v3647_v25 }
 0x14a   : > { %2546 = vmatprep.subr.bf16.mxu1 %v2920_v15  ;;  %2514 = vmatpush3.bf16.msra.mxu0 %v2919_v14 }
 0x14b   : > { %1525 = vmatprep.mubr.bf16.mxu0 %v3647_v25  ;;  %2515 = vmatprep.subr.bf16.mxu0 %v2920_v15  ;;  %v575_v15 = vld [vmem:[#allocation2 + $0x180] sm:$0xff] }
 0x14d   : > { %2554 = vmatpush3.bf16.msra.mxu1 %v2921_v17 }
 0x14e   : > { %2547 = vmatprep.subr.bf16.mxu1 %v2922_v18  ;;  %2516 = vmatpush3.bf16.msra.mxu0 %v2921_v17  ;;  %v563_v17 = vld [vmem:[#allocation2 + $0x120] sm:$0xff] }
 0x14f   : > { %2517 = vmatprep.subr.bf16.mxu0 %v2922_v18 }
 0x150   : > { %1589 = vmatmul.mubr.bf16.gmra.mrb[20].mxu1 %v3653_v27  ;;  %1526 = vmatmul.mubr.bf16.gmra.mrb[20].mxu0 %v3653_v27 }
 0x151   : > { %2555 = vmatpush3.bf16.msra.mxu1 %v2923_v20  ;;  %1639 = vmatprep.mubr.bf16.mxu1 %v3631_v16  ;;  %v530_v16 = vld [vmem:[#allocation2 + $0x18] sm:$0xff] }
 0x152   : > { %2548 = vmatprep.subr.bf16.mxu1 %v2924_v21  ;;  %2518 = vmatpush3.bf16.msra.mxu0 %v2923_v20 }
 0x153   : > { %1631 = vmatprep.mubr.bf16.mxu0 %v3589_v46  ;;  %2519 = vmatprep.subr.bf16.mxu0 %v2924_v21  ;;  %v529_v46 = vld [vmem:[#allocation2 + $0x10] sm:$0xff]  ;;  %v564_v21 = vld [vmem:[#allocation2 + $0x128] sm:$0xff] }
 0x155   : > { %2556 = vmatpush3.bf16.msra.mxu1 %v2925_v22 }
 0x156   : > { %2549 = vmatprep.subr.bf16.mxu1 %v2926_v23  ;;  %2520 = vmatpush3.bf16.msra.mxu0 %v2925_v22 }
 0x157   : > { %2521 = vmatprep.subr.bf16.mxu0 %v2926_v23 }
 0x159   : > { %2557 = vmatpush3.bf16.msra.mxu1 %v2927_v24 }
 0x15a   : > { %2550 = vmatprep.subr.bf16.mxu1 %v2928_v26  ;;  %2522 = vmatpush3.bf16.msra.mxu0 %v2927_v24 }
 0x15b   : > { %2523 = vmatprep.subr.bf16.mxu0 %v2928_v26  ;;  %v572_v26 = vld [vmem:[#allocation2 + $0x168] sm:$0xff] }
 0x15d   : > { %2558 = vmatpush3.bf16.msra.mxu1 %v2929_v28 }
 0x15e   : > { %2524 = vmatpush3.bf16.msra.mxu0 %v2929_v28 }
 0x160   : > { %1640 = vmatmul.mubr.bf16.vlgmr.msra.gmra.mrb[24].mxu1 %v3636_v19 }
 0x161   : > { %1647 = vmatprep.mubr.bf16.mxu1 %v3647_v25  ;;  %1632 = vmatmul.mubr.bf16.vlgmr.msra.gmra.mrb[24].mxu0 %v3613_v2  ;;  %v536_v25 = vld [vmem:[#allocation2 + $0x48] sm:$0xff] }
 0x168   : > { %1648 = vmatmul.mubr.bf16.gmra.mrb[28].mxu1 %v3653_v27 }
 0x1d3   : > { %v1444_v29 = vpop.f32.mrb[0].mxu1  ;;  %v1381_v39 = vpop.f32.mrb[0].mxu0 }
 0x1d4   : > { %v1658_v31 = vadd.f32 %v1444_v29, %v529_v46  ;;  %v1446_v32 = vpop.f32.mrb[1].mxu1  ;;  %v1656_v40 = vadd.f32 %v1381_v39, %v527_v34  ;;  %v1383_v27 = vpop.f32.mrb[1].mxu0  ;;  %v573_v29 = vld [vmem:[#allocation2 + $0x170] sm:$0xff] }
 0x1d5   : > { %v1659_v35 = vadd.f32 %v1446_v32, %v530_v16  ;;  %v1448_v36 = vpop.f32.mrb[2].mxu1  ;;  %v1657_v42 = vadd.f32 %v1383_v27, %v528_v37  ;;  %v1385_v43 = vpop.f32.mrb[2].mxu0 }
 0x1d6   : > { %1712 = vst [vmem:[#allocation2 + $0x10] sm:$0xff] %v1658_v31  ;;  %v1667_v19 = vadd.f32 %v1448_v36, %v538_v30  ;;  %v1450_v38 = vpop.f32.mrb[3].mxu1  ;;  %1710 = vst [vmem:[#allocation2] sm:$0xff] %v1656_v40  ;;  %v1665_v44 = vadd.f32 %v1385_v43, %v536_v25  ;;  %v1387_v45 = vpop.f32.mrb[3].mxu0  ;;  %v534_v36 = vld [vmem:[#allocation2 + $0x38] sm:$0xff]  ;;  %v543_v25 = vld [vmem:[#allocation2 + $0x80] sm:$0xff] }
 0x1d7   : > { %1713 = vst [vmem:[#allocation2 + $0x18] sm:$0xff] %v1659_v35  ;;  %v1668_v2 = vadd.f32 %v1450_v38, %v539_v33  ;;  %1711 = vst [vmem:[#allocation2 + $0x8] sm:$0xff] %v1657_v42  ;;  %v1666_v47 = vadd.f32 %v1387_v45, %v537_v41  ;;  %v533_v35 = vld [vmem:[#allocation2 + $0x30] sm:$0xff]  ;;  %v532_v41 = vld [vmem:[#allocation2 + $0x28] sm:$0xff] }
 0x1d8   : > { %1721 = vst [vmem:[#allocation2 + $0x58] sm:$0xff] %v1667_v19  ;;  %1719 = vst [vmem:[#allocation2 + $0x48] sm:$0xff] %v1665_v44  ;;  %v542_v19 = vld [vmem:[#allocation2 + $0x78] sm:$0xff]  ;;  %v540_v45 = vld [vmem:[#allocation2 + $0x68] sm:$0xff] }
 0x1d9   : > { %1722 = vst [vmem:[#allocation2 + $0x60] sm:$0xff] %v1668_v2  ;;  %1720 = vst [vmem:[#allocation2 + $0x50] sm:$0xff] %v1666_v47  ;;  %v531_v2 = vld [vmem:[#allocation2 + $0x20] sm:$0xff] }
 0x1db   : > { %v1454_v50 = vpop.f32.mrb[4].mxu1  ;;  %v1391_v61 = vpop.f32.mrb[4].mxu0 }
 0x1dc   : > { %v1676_v52 = vadd.f32 %v1454_v50, %v547_v48  ;;  %v1456_v53 = vpop.f32.mrb[5].mxu1  ;;  %v1674_v0 = vadd.f32 %v1391_v61, %v545_v55  ;;  %v1393_v1 = vpop.f32.mrb[5].mxu0  ;;  %v541_v50 = vld [vmem:[#allocation2 + $0x70] sm:$0xff]  ;;  %v551_v55 = vld [vmem:[#allocation2 + $0xc0] sm:$0xff] }
 0x1dd   : > { %v1677_v56 = vadd.f32 %v1456_v53, %v548_v49  ;;  %v1458_v57 = vpop.f32.mrb[6].mxu1  ;;  %v1675_v4 = vadd.f32 %v1393_v1, %v546_v58  ;;  %v1395_v5 = vpop.f32.mrb[6].mxu0 }
 0x1de   : > { %1730 = vst [vmem:[#allocation2 + $0xa0] sm:$0xff] %v1676_v52  ;;  %v1685_v59 = vadd.f32 %v1458_v57, %v556_v51  ;;  %v1460_v60 = vpop.f32.mrb[7].mxu1  ;;  %1728 = vst [vmem:[#allocation2 + $0x90] sm:$0xff] %v1674_v0  ;;  %v1683_v7 = vadd.f32 %v1395_v5, %v554_v62  ;;  %v1397_v8 = vpop.f32.mrb[7].mxu0  ;;  %v552_v57 = vld [vmem:[#allocation2 + $0xc8] sm:$0xff]  ;;  %v561_v62 = vld [vmem:[#allocation2 + $0x110] sm:$0xff] }
 0x1df   : > { %1731 = vst [vmem:[#allocation2 + $0xa8] sm:$0xff] %v1677_v56  ;;  %v1686_v63 = vadd.f32 %v1460_v60, %v557_v54  ;;  %1729 = vst [vmem:[#allocation2 + $0x98] sm:$0xff] %v1675_v4  ;;  %v1684_v10 = vadd.f32 %v1397_v8, %v555_v3  ;;  %v550_v3 = vld [vmem:[#allocation2 + $0xb8] sm:$0xff] }
 0x1e0   : > { %1739 = vst [vmem:[#allocation2 + $0xe8] sm:$0xff] %v1685_v59  ;;  %1737 = vst [vmem:[#allocation2 + $0xd8] sm:$0xff] %v1683_v7  ;;  %v560_v59 = vld [vmem:[#allocation2 + $0x108] sm:$0xff]  ;;  %v558_v7 = vld [vmem:[#allocation2 + $0xf8] sm:$0xff] }
 0x1e1   : > { %1740 = vst [vmem:[#allocation2 + $0xf0] sm:$0xff] %v1686_v63  ;;  %1738 = vst [vmem:[#allocation2 + $0xe0] sm:$0xff] %v1684_v10  ;;  %v549_v63 = vld [vmem:[#allocation2 + $0xb0] sm:$0xff] }
 0x1e3   : > { %v1464_v11 = vpop.f32.mrb[8].mxu1  ;;  %v1401_v24 = vpop.f32.mrb[8].mxu0 }
 0x1e4   : > { %v1694_v13 = vadd.f32 %v1464_v11, %v565_v6  ;;  %v1466_v14 = vpop.f32.mrb[9].mxu1  ;;  %v1692_v46 = vadd.f32 %v1401_v24, %v563_v17  ;;  %v1403_v16 = vpop.f32.mrb[9].mxu0  ;;  %v559_v11 = vld [vmem:[#allocation2 + $0x100] sm:$0xff] }
 0x1e5   : > { %v1695_v18 = vadd.f32 %v1466_v14, %v566_v9  ;;  %v1468_v20 = vpop.f32.mrb[10].mxu1  ;;  %v1693_v30 = vadd.f32 %v1403_v16, %v564_v21  ;;  %v1405_v31 = vpop.f32.mrb[10].mxu0  ;;  %v569_v14 = vld [vmem:[#allocation2 + $0x150] sm:$0xff] }
 0x1e6   : > { %1748 = vst [vmem:[#allocation2 + $0x130] sm:$0xff] %v1694_v13  ;;  %v1703_v22 = vadd.f32 %v1468_v20, %v574_v12  ;;  %v1470_v23 = vpop.f32.mrb[11].mxu1  ;;  %1746 = vst [vmem:[#allocation2 + $0x120] sm:$0xff] %v1692_v46  ;;  %v1701_v32 = vadd.f32 %v1405_v31, %v572_v26  ;;  %v1407_v33 = vpop.f32.mrb[11].mxu0  ;;  %v579_v26 = vld [vmem:[#allocation2 + $0x1a0] sm:$0xff] }
 0x1e7   : > { %1749 = vst [vmem:[#allocation2 + $0x138] sm:$0xff] %v1695_v18  ;;  %v1704_v28 = vadd.f32 %v1470_v23, %v575_v15  ;;  %1747 = vst [vmem:[#allocation2 + $0x128] sm:$0xff] %v1693_v30  ;;  %v1702_v34 = vadd.f32 %v1407_v33, %v573_v29  ;;  %v570_v18 = vld [vmem:[#allocation2 + $0x158] sm:$0xff]  ;;  %v568_v29 = vld [vmem:[#allocation2 + $0x148] sm:$0xff] }
 0x1e8   : > { %1757 = vst [vmem:[#allocation2 + $0x178] sm:$0xff] %v1703_v22  ;;  %1755 = vst [vmem:[#allocation2 + $0x168] sm:$0xff] %v1701_v32  ;;  %v578_v22 = vld [vmem:[#allocation2 + $0x198] sm:$0xff]  ;;  %v576_v33 = vld [vmem:[#allocation2 + $0x188] sm:$0xff] }
 0x1e9   : > { %1758 = vst [vmem:[#allocation2 + $0x180] sm:$0xff] %v1704_v28  ;;  %1756 = vst [vmem:[#allocation2 + $0x170] sm:$0xff] %v1702_v34  ;;  %v567_v28 = vld [vmem:[#allocation2 + $0x140] sm:$0xff] }
 0x213   : > { %v1570_v37 = vpop.f32.mrb[12].mxu1  ;;  %v1507_v44 = vpop.f32.mrb[12].mxu0 }
 0x214   : > { %v1662_v38 = vadd.f32 %v1570_v37, %v533_v35  ;;  %v1572_v39 = vpop.f32.mrb[13].mxu1  ;;  %v1660_v48 = vadd.f32 %v1507_v44, %v531_v2  ;;  %v1509_v49 = vpop.f32.mrb[13].mxu0  ;;  %v577_v37 = vld [vmem:[#allocation2 + $0x190] sm:$0xff]  ;;  %v562_v44 = vld [vmem:[#allocation2 + $0x118] sm:$0xff] }
 0x215   : > { %v1663_v40 = vadd.f32 %v1572_v39, %v534_v36  ;;  %v1574_v27 = vpop.f32.mrb[14].mxu1  ;;  %v1661_v51 = vadd.f32 %v1509_v49, %v532_v41  ;;  %v1511_v52 = vpop.f32.mrb[14].mxu0 }
 0x216   : > { %1716 = vst [vmem:[#allocation2 + $0x30] sm:$0xff] %v1662_v38  ;;  %v1671_v42 = vadd.f32 %v1574_v27, %v542_v19  ;;  %v1576_v43 = vpop.f32.mrb[15].mxu1  ;;  %1714 = vst [vmem:[#allocation2 + $0x20] sm:$0xff] %v1660_v48  ;;  %v1669_v53 = vadd.f32 %v1511_v52, %v540_v45  ;;  %v1513_v54 = vpop.f32.mrb[15].mxu0  ;;  %v553_v27 = vld [vmem:[#allocation2 + $0xd0] sm:$0xff] }
 0x217   : > { %1717 = vst [vmem:[#allocation2 + $0x38] sm:$0xff] %v1663_v40  ;;  %v1672_v47 = vadd.f32 %v1576_v43, %v543_v25  ;;  %1715 = vst [vmem:[#allocation2 + $0x28] sm:$0xff] %v1661_v51  ;;  %v1670_v56 = vadd.f32 %v1513_v54, %v541_v50  ;;  %v535_v50 = vld [vmem:[#allocation2 + $0x40] sm:$0xff] }
 0x218   : > { %1725 = vst [vmem:[#allocation2 + $0x78] sm:$0xff] %v1671_v42  ;;  %1723 = vst [vmem:[#allocation2 + $0x68] sm:$0xff] %v1669_v53 }
 0x219   : > { %1726 = vst [vmem:[#allocation2 + $0x80] sm:$0xff] %v1672_v47  ;;  %1724 = vst [vmem:[#allocation2 + $0x70] sm:$0xff] %v1670_v56 }
 0x21b   : > { %v1580_v58 = vpop.f32.mrb[16].mxu1  ;;  %v1517_v6 = vpop.f32.mrb[16].mxu0 }
 0x21c   : > { %v1680_v60 = vadd.f32 %v1580_v58, %v551_v55  ;;  %v1582_v61 = vpop.f32.mrb[17].mxu1  ;;  %v1678_v9 = vadd.f32 %v1517_v6, %v549_v63  ;;  %v1519_v10 = vpop.f32.mrb[17].mxu0  ;;  %v544_v55 = vld [vmem:[#allocation2 + $0x88] sm:$0xff] }
 0x21d   : > { %v1681_v0 = vadd.f32 %v1582_v61, %v552_v57  ;;  %v1584_v1 = vpop.f32.mrb[18].mxu1  ;;  %v1679_v12 = vadd.f32 %v1519_v10, %v550_v3  ;;  %v1521_v13 = vpop.f32.mrb[18].mxu0  ;;  %v571_v61 = vld [vmem:[#allocation2 + $0x160] sm:$0xff] }
 0x21e   : > { %1734 = vst [vmem:[#allocation2 + $0xc0] sm:$0xff] %v1680_v60  ;;  %v1689_v4 = vadd.f32 %v1584_v1, %v560_v59  ;;  %v1586_v5 = vpop.f32.mrb[19].mxu1  ;;  %1732 = vst [vmem:[#allocation2 + $0xb0] sm:$0xff] %v1678_v9  ;;  %v1687_v15 = vadd.f32 %v1521_v13, %v558_v7  ;;  %v1523_v17 = vpop.f32.mrb[19].mxu0  ;;  %v580_v1 = vld [vmem:[#allocation2 + $0x1a8] sm:$0xff]  ;;  %v1826_v7 = vlaneseq (!%p2441_p8)  ;;  %v1768_v9 = vld [vmem:[#allocation2] sm:$0xff] (!%p2441_p8) }
 0x21f   : > { %1735 = vst [vmem:[#allocation2 + $0xc8] sm:$0xff] %v1681_v0  ;;  %v1690_v8 = vadd.f32 %v1586_v5, %v561_v62  ;;  %1733 = vst [vmem:[#allocation2 + $0xb8] sm:$0xff] %v1679_v12  ;;  %v1688_v20 = vadd.f32 %v1523_v17, %v559_v11  ;;  %v1822_v10 = vld [vmem:[%s3533_s15] sm:$0xff] (!%p2441_p8)  ;;  %v1769_v11 = vld [vmem:[#allocation2 + $0x8] sm:$0xff] (!%p2441_p8) }
 0x220   : > { %1743 = vst [vmem:[#allocation2 + $0x108] sm:$0xff] %v1689_v4  ;;  %1741 = vst [vmem:[#allocation2 + $0xf8] sm:$0xff] %v1687_v15 }
 0x221   : > { %1744 = vst [vmem:[#allocation2 + $0x110] sm:$0xff] %v1690_v8  ;;  %1742 = vst [vmem:[#allocation2 + $0x100] sm:$0xff] %v1688_v20  ;;  %v1827_v8 = vshrl.u32 (!%p2441_p8), %v1826_v7, 7  ;;  %v1772_v20 = vld [vmem:[#allocation2 + $0x20] sm:$0xff] (!%p2441_p8) }
 0x223   : > { %v1590_v21 = vpop.f32.mrb[20].mxu1  ;;  %v1527_v32 = vpop.f32.mrb[20].mxu0  ;;  %v1828_v12 = vsub.s32 (!%p2441_p8), 0, %v1827_v8  ;;  %v1832_v13 = vsub.s32 (!%p2441_p8), 1, %v1827_v8  ;;  %v1836_v15 = vsub.s32 (!%p2441_p8), 2, %v1827_v8  ;;  %v1840_v17 = vsub.s32 (!%p2441_p8), 3, %v1827_v8 }
 0x224   : > { %v1698_v23 = vadd.f32 %v1590_v21, %v569_v14  ;;  %v1592_v24 = vpop.f32.mrb[21].mxu1  ;;  %v1696_v35 = vadd.f32 %v1527_v32, %v567_v28  ;;  %v1529_v36 = vpop.f32.mrb[21].mxu0  ;;  %v1770_v14 = vld [vmem:[#allocation2 + $0x10] sm:$0xff] (!%p2441_p8)  ;;  %v1844_v21 = vsub.s32 (!%p2441_p8), 4, %v1827_v8 }
 0x225   : > { %v1699_v46 = vadd.f32 %v1592_v24, %v570_v18  ;;  %v1594_v16 = vpop.f32.mrb[22].mxu1  ;;  %v1697_v19 = vadd.f32 %v1529_v36, %v568_v29  ;;  %v1531_v38 = vpop.f32.mrb[22].mxu0  ;;  %v1771_v18 = vld [vmem:[#allocation2 + $0x18] sm:$0xff] (!%p2441_p8)  ;;  %v1856_v24 = vsub.s32 (!%p2441_p8), 7, %v1827_v8  ;;  %v3739_v28 = vrot.slane (!%p2441_p8), %v1822_v10, %v1832_v13  ;;  %v1773_v29 = vld [vmem:[#allocation2 + $0x28] sm:$0xff] (!%p2441_p8) }
 0x226   : > { %1752 = vst [vmem:[#allocation2 + $0x150] sm:$0xff] %v1698_v23  ;;  %v1707_v30 = vadd.f32 %v1594_v16, %v578_v22  ;;  %v1596_v31 = vpop.f32.mrb[23].mxu1  ;;  %1750 = vst [vmem:[#allocation2 + $0x140] sm:$0xff] %v1696_v35  ;;  %v1705_v39 = vadd.f32 %v1531_v38, %v576_v33  ;;  %v1533_v25 = vpop.f32.mrb[23].mxu0  ;;  %v1848_v22 = vsub.s32 (!%p2441_p8), 5, %v1827_v8  ;;  %v1852_v23 = vsub.s32 (!%p2441_p8), 6, %v1827_v8 }
 0x227   : > { %1753 = vst [vmem:[#allocation2 + $0x158] sm:$0xff] %v1699_v46  ;;  %v1708_v34 = vadd.f32 %v1596_v31, %v579_v26  ;;  %1751 = vst [vmem:[#allocation2 + $0x148] sm:$0xff] %v1697_v19  ;;  %v1706_v2 = vadd.f32 %v1533_v25, %v577_v37  ;;  %v3737_v26 = vrot.slane (!%p2441_p8), %v1822_v10, %v1828_v12  ;;  %v1775_v31 = vld [vmem:[#allocation2 + $0x38] sm:$0xff] (!%p2441_p8)  ;;  %v1777_v19 = vld [vmem:[#allocation2 + $0x48] sm:$0xff] (!%p2441_p8) }
 0x228   : > { %1761 = vst [vmem:[#allocation2 + $0x198] sm:$0xff] %v1707_v30  ;;  %1759 = vst [vmem:[#allocation2 + $0x188] sm:$0xff] %v1705_v39  ;;  %v3741_v46 = vrot.slane (!%p2441_p8), %v1822_v10, %v1836_v15  ;;  %v3743_v16 = vrot.slane (!%p2441_p8), %v1822_v10, %v1840_v17  ;;  %v1774_v30 = vld [vmem:[#allocation2 + $0x30] sm:$0xff] (!%p2441_p8)  ;;  %v3745_v32 = vrot.slane (!%p2441_p8), %v1822_v10, %v1844_v21  ;;  %v3754_v37 = vld [vmem:[%s3533_s15 + $0x8] ss:$0 sm:$0xff] (!%p2441_p8) }
 0x229   : > { %1762 = vst [vmem:[#allocation2 + $0x1a0] sm:$0xff] %v1708_v34  ;;  %1760 = vst [vmem:[#allocation2 + $0x190] sm:$0xff] %v1706_v2  ;;  %v3747_v33 = vrot.slane (!%p2441_p8), %v1822_v10, %v1848_v22  ;;  %v3749_v34 = vrot.slane (!%p2441_p8), %v1822_v10, %v1852_v23  ;;  %v3751_v35 = vrot.slane (!%p2441_p8), %v1822_v10, %v1856_v24  ;;  %v1791_v10 = vld [vmem:[#allocation2 + $0xb8] sm:$0xff] (!%p2441_p8)  ;;  %v1793_v17 = vld [vmem:[#allocation2 + $0xc8] sm:$0xff] (!%p2441_p8) }
 0x22a   : > { %v1871_v38 = vadd.f32 (!%p2441_p8), %v3737_v26, %v1768_v9  ;;  %v1872_v39 = vadd.f32 (!%p2441_p8), %v3739_v28, %v1769_v11  ;;  %v1873_v25 = vadd.f32 (!%p2441_p8), %v3741_v46, %v1770_v14  ;;  %v1874_v2 = vadd.f32 (!%p2441_p8), %v3743_v16, %v1771_v18  ;;  %v1790_v9 = vld [vmem:[#allocation2 + $0xb0] sm:$0xff] (!%p2441_p8)  ;;  %v1792_v11 = vld [vmem:[#allocation2 + $0xc0] sm:$0xff] (!%p2441_p8) }
 0x233   : > { %v2531_v40 = vpop.f32.mrb[24].mxu1 }
 0x234   : > { %v2532_v41 = vpop.f32.mrb[25].mxu1  ;;  %v2525_v47 = vpop.f32.mrb[24].mxu0 }
 0x235   : > { %v2533_v42 = vadd.f32 %v2532_v41, %v2531_v40  ;;  %v2534_v43 = vpop.f32.mrb[26].mxu1  ;;  %v2526_v51 = vpop.f32.mrb[25].mxu0  ;;  %v1778_v40 = vld [vmem:[#allocation2 + $0x50] sm:$0xff] (!%p2441_p8)  ;;  %v1875_v41 = vadd.f32 (!%p2441_p8), %v3745_v32, %v1772_v20  ;;  %v1795_v20 = vld [vmem:[#allocation2 + $0xd8] sm:$0xff] (!%p2441_p8) }
 0x236   : > { %v2535_v45 = vpop.f32.mrb[27].mxu1  ;;  %v2527_v52 = vadd.f32 %v2526_v51, %v2525_v47  ;;  %v2528_v53 = vpop.f32.mrb[26].mxu0  ;;  %v1781_v47 = vld [vmem:[#allocation2 + $0x68] sm:$0xff] (!%p2441_p8) }
 0x237   : > { %v1682_v48 = vadd.f32 %v2533_v42, %v553_v27  ;;  %v2536_v49 = vadd.f32 %v2535_v45, %v2534_v43  ;;  %v2529_v56 = vpop.f32.mrb[27].mxu0  ;;  %v1779_v27 = vld [vmem:[#allocation2 + $0x58] sm:$0xff] (!%p2441_p8)  ;;  %v1876_v42 = vadd.f32 (!%p2441_p8), %v3747_v33, %v1773_v29  ;;  %v1877_v43 = vadd.f32 (!%p2441_p8), %v3749_v34, %v1774_v30  ;;  %v1780_v45 = vld [vmem:[#allocation2 + $0x60] sm:$0xff] (!%p2441_p8)  ;;  %v1797_v30 = vld [vmem:[#allocation2 + $0xe8] sm:$0xff] (!%p2441_p8) }
 0x238   : > { %v1664_v57 = vadd.f32 %v2527_v52, %v535_v50  ;;  %v2530_v58 = vadd.f32 %v2529_v56, %v2528_v53  ;;  %v2479_v50 = vpack.c.bf16 (!%p2441_p8), %v1874_v2, %v1873_v25  ;;  %v1880_v52 = vadd.f32 (!%p2441_p8), %v3737_v26, %v1777_v19  ;;  %v1783_v53 = vld [vmem:[#allocation2 + $0x78] sm:$0xff] (!%p2441_p8)  ;;  %v1796_v29 = vld [vmem:[#allocation2 + $0xe0] sm:$0xff] (!%p2441_p8) }
 0x239   : > { %1736 = vst [vmem:[#allocation2 + $0xd0] sm:$0xff] %v1682_v48  ;;  %v1691_v54 = vadd.f32 %v2536_v49, %v562_v44  ;;  %v1878_v44 = vadd.f32 (!%p2441_p8), %v3751_v35, %v1775_v31  ;;  %v1782_v48 = vld [vmem:[#allocation2 + $0x70] sm:$0xff] (!%p2441_p8)  ;;  %v2478_v49 = vpack.c.bf16 (!%p2441_p8), %v1872_v39, %v1871_v38  ;;  %v2480_v56 = vpack.c.bf16 (!%p2441_p8), %v1876_v42, %v1875_v41  ;;  %v1799_v25 = vld [vmem:[#allocation2 + $0xf8] sm:$0xff] (!%p2441_p8)  ;;  %v1800_v2 = vld [vmem:[#allocation2 + $0x100] sm:$0xff] (!%p2441_p8) }
 0x23a   : > { %1718 = vst [vmem:[#allocation2 + $0x40] sm:$0xff] %v1664_v57  ;;  %v1673_v60 = vadd.f32 %v2530_v58, %v544_v55  ;;  %v1881_v58 = vadd.f32 (!%p2441_p8), %v3739_v28, %v1778_v40  ;;  %2094 = vst [vmem:[%s3540_s24 + $0x8] sm:$0xff] (!%p2441_p8), %v2479_v50  ;;  %v1798_v31 = vld [vmem:[#allocation2 + $0xf0] sm:$0xff] (!%p2441_p8)  ;;  %v1893_v19 = vadd.f32 (!%p2441_p8), %v3745_v32, %v1790_v9  ;;  %v1813_v9 = vld [vmem:[#allocation2 + $0x168] sm:$0xff] (!%p2441_p8) }
 0x23b   : > { %1745 = vst [vmem:[#allocation2 + $0x118] sm:$0xff] %v1691_v54  ;;  %v2537_v59 = vpop.f32.mrb[28].mxu1  ;;  %v1784_v54 = vld [vmem:[#allocation2 + $0x80] sm:$0xff] (!%p2441_p8)  ;;  %v2481_v57 = vpack.c.bf16 (!%p2441_p8), %v1878_v44, %v1877_v43  ;;  %2093 = vst [vmem:[%s3540_s24] sm:$0xff] (!%p2441_p8), %v2478_v49  ;;  %v1894_v38 = vadd.f32 (!%p2441_p8), %v3747_v33, %v1791_v10  ;;  %v1895_v39 = vadd.f32 (!%p2441_p8), %v3749_v34, %v1792_v11  ;;  %v1801_v43 = vld [vmem:[#allocation2 + $0x108] sm:$0xff] (!%p2441_p8) }
 0x23c   : > { %v2538_v62 = vpop.f32.mrb[29].mxu1  ;;  %1727 = vst [vmem:[#allocation2 + $0x88] sm:$0xff] %v1673_v60  ;;  %v1786_v60 = vld [vmem:[#allocation2 + $0x90] sm:$0xff] (!%p2441_p8)  ;;  %2095 = vst [vmem:[%s3540_s24 + $0x10] sm:$0xff] (!%p2441_p8), %v2480_v56  ;;  %v1887_v7 = vadd.f32 (!%p2441_p8), %v3751_v35, %v1784_v54  ;;  %v1898_v42 = vadd.f32 (!%p2441_p8), %v3737_v26, %v1795_v20  ;;  %v1901_v49 = vadd.f32 (!%p2441_p8), %v3743_v16, %v1798_v31 }
 0x23d   : > { %v2539_v63 = vadd.f32 %v2538_v62, %v2537_v59  ;;  %v2540_v0 = vpop.f32.mrb[30].mxu1  ;;  %1767 = sbr.rel (%p2441_p8) target bundleno = 596 (0x254), region = 52  ;;  %v1882_v59 = vadd.f32 (!%p2441_p8), %v3741_v46, %v1779_v27  ;;  %2096 = vst [vmem:[%s3540_s24 + $0x18] sm:$0xff] (!%p2441_p8), %v2481_v57  ;;  %v1889_v14 = vadd.f32 (!%p2441_p8), %v3737_v26, %v1786_v60  ;;  %v1896_v27 = vadd.f32 (!%p2441_p8), %v3751_v35, %v1793_v17  ;;  %v1802_v44 = vld [vmem:[#allocation2 + $0x110] sm:$0xff] (!%p2441_p8)  ;;  %v1816_v17 = vld [vmem:[#allocation2 + $0x180] sm:$0xff] (!%p2441_p8) }
 0x23e   : > { %v2541_v3 = vpop.f32.mrb[31].mxu1  ;;  %v1903_v56 = vadd.f32 (!%p2441_p8), %v3747_v33, %v1800_v2  ;;  %v1806_v57 = vld [vmem:[#allocation2 + $0x130] sm:$0xff] (!%p2441_p8) }
 0x23f   : > { %v1700_v4 = vadd.f32 %v2539_v63, %v571_v61  ;;  %v2542_v5 = vadd.f32 %v2541_v3, %v2540_v0  ;;  %v1787_v61 = vld [vmem:[#allocation2 + $0x98] sm:$0xff] (!%p2441_p8)  ;;  %v1883_v63 = vadd.f32 (!%p2441_p8), %v3743_v16, %v1780_v45  ;;  %v1884_v0 = vadd.f32 (!%p2441_p8), %v3745_v32, %v1781_v47  ;;  %v1788_v3 = vld [vmem:[#allocation2 + $0xa0] sm:$0xff] (!%p2441_p8) }
 0x240   : > { %v1890_v15 = vadd.f32 (!%p2441_p8), %v3739_v28, %v1787_v61  ;;  %v1794_v18 = vld [vmem:[#allocation2 + $0xd0] sm:$0xff] (!%p2441_p8)  ;;  %v1891_v23 = vadd.f32 (!%p2441_p8), %v3741_v46, %v1788_v3  ;;  %v2490_v45 = vpack.c.bf16 (!%p2441_p8), %v1894_v38, %v1893_v19  ;;  %v1899_v47 = vadd.f32 (!%p2441_p8), %v3739_v28, %v1796_v29  ;;  %v1819_v19 = vld [vmem:[#allocation2 + $0x198] sm:$0xff] (!%p2441_p8)  ;;  %v1820_v38 = vld [vmem:[#allocation2 + $0x1a0] sm:$0xff] (!%p2441_p8) }
 0x241   : > { %1754 = vst [vmem:[#allocation2 + $0x160] sm:$0xff] %v1700_v4  ;;  %v1709_v6 = vadd.f32 %v2542_v5, %v580_v1  ;;  %v1776_v36 = vld [vmem:[#allocation2 + $0x40] sm:$0xff] (!%p2441_p8)  ;;  %v1885_v1 = vadd.f32 (!%p2441_p8), %v3747_v33, %v1782_v48  ;;  %v1789_v4 = vld [vmem:[#allocation2 + $0xa8] sm:$0xff] (!%p2441_p8)  ;;  %v2483_v5 = vpack.c.bf16 (!%p2441_p8), %v1881_v58, %v1880_v52  ;;  %v2484_v12 = vpack.c.bf16 (!%p2441_p8), %v1883_v63, %v1882_v59  ;;  %v1807_v58 = vld [vmem:[#allocation2 + $0x138] sm:$0xff] (!%p2441_p8) }
 0x242   : > { %v1879_v51 = vadd.f32 (!%p2441_p8), %v3754_v37, %v1776_v36  ;;  %v1892_v24 = vadd.f32 (!%p2441_p8), %v3743_v16, %v1789_v4  ;;  %v2488_v36 = vpack.c.bf16 (!%p2441_p8), %v1890_v15, %v1889_v14  ;;  %v1897_v41 = vadd.f32 (!%p2441_p8), %v3754_v37, %v1794_v18  ;;  %v1803_v50 = vld [vmem:[#allocation2 + $0x118] sm:$0xff] (!%p2441_p8)  ;;  %v1805_v52 = vld [vmem:[#allocation2 + $0x128] sm:$0xff] (!%p2441_p8)  ;;  %v1808_v59 = vld [vmem:[#allocation2 + $0x140] sm:$0xff] (!%p2441_p8)  ;;  %2105 = vst [vmem:[%s3540_s24 + $0x58] sm:$0xff] (!%p2441_p8), %v2490_v45 }
 0x243   : > { %1763 = vst [vmem:[#allocation2 + $0x1a8] sm:$0xff] %v1709_v6  ;;  %v1785_v55 = vld [vmem:[#allocation2 + $0x88] sm:$0xff] (!%p2441_p8)  ;;  %v1886_v6 = vadd.f32 (!%p2441_p8), %v3749_v34, %v1783_v53  ;;  %v2485_v13 = vpack.c.bf16 (!%p2441_p8), %v1885_v1, %v1884_v0  ;;  %2098 = vst [vmem:[%s3540_s24 + $0x24] sm:$0xff] (!%p2441_p8), %v2483_v5  ;;  %v1900_v48 = vadd.f32 (!%p2441_p8), %v3741_v46, %v1797_v30  ;;  %v1810_v1 = vld [vmem:[#allocation2 + $0x150] sm:$0xff] (!%p2441_p8) }
 0x244   : > { %v2482_v62 = vpack.c.bf16 %v1879_v51, %v1879_v51  ;;  %v1888_v8 = vadd.f32 %v3754_v37, %v1785_v55  ;;  %2099 = vst [vmem:[%s3540_s24 + $0x2c] sm:$0xff] %v2484_v12  ;;  %v2489_v40 = vpack.c.bf16 %v1892_v24, %v1891_v23  ;;  %2103 = vst [vmem:[%s3540_s24 + $0x48] sm:$0xff] %v2488_v36  ;;  %v1804_v51 = vld [vmem:[#allocation2 + $0x120] sm:$0xff]  ;;  %v1809_v0 = vld [vmem:[#allocation2 + $0x148] sm:$0xff] }
 0x245   : > { %v2486_v21 = vpack.c.bf16 %v1887_v7, %v1886_v6  ;;  %2100 = vst [vmem:[%s3540_s24 + $0x34] sm:$0xff] %v2485_v13  ;;  %v2491_v53 = vpack.c.bf16 %v1896_v27, %v1895_v39  ;;  %v2492_v54 = vpack.c.bf16 %v1897_v41, %v1897_v41  ;;  %v1902_v55 = vadd.f32 %v3745_v32, %v1799_v25  ;;  %v1811_v7 = vld [vmem:[#allocation2 + $0x158] sm:$0xff]  ;;  %v1814_v14 = vld [vmem:[#allocation2 + $0x170] sm:$0xff]  ;;  %v1817_v23 = vld [vmem:[#allocation2 + $0x188] sm:$0xff] }
 0x246   : > { %2097 = vst [vmem:[%s3540_s24 + $0x20] sm:$0xf] %v2482_v62  ;;  %v2487_v22 = vpack.c.bf16 %v1888_v8, %v1888_v8  ;;  %2104 = vst [vmem:[%s3540_s24 + $0x50] sm:$0xff] %v2489_v40  ;;  %v2493_v60 = vpack.c.bf16 %v1899_v47, %v1898_v42  ;;  %v2494_v61 = vpack.c.bf16 %v1901_v49, %v1900_v48  ;;  %v1815_v15 = vld [vmem:[#allocation2 + $0x178] sm:$0xff]  ;;  %v1818_v24 = vld [vmem:[#allocation2 + $0x190] sm:$0xff] }
 0x247   : > { %2101 = vst [vmem:[%s3540_s24 + $0x3c] sm:$0xff] %v2486_v21  ;;  %v1904_v62 = vadd.f32 %v3749_v34, %v1801_v43  ;;  %v1905_v63 = vadd.f32 %v3751_v35, %v1802_v44  ;;  %2106 = vst [vmem:[%s3540_s24 + $0x60] sm:$0xff] %v2491_v53  ;;  %v2495_v3 = vpack.c.bf16 %v1903_v56, %v1902_v55 }
 0x248   : > { %2102 = vst [vmem:[%s3540_s24 + $0x44] sm:$0xf] %v2487_v22  ;;  %2107 = vst [vmem:[%s3540_s24 + $0x68] sm:$0xf] %v2492_v54  ;;  %v1906_v4 = vadd.f32 %v3754_v37, %v1803_v50  ;;  %v1907_v5 = vadd.f32 %v3737_v26, %v1804_v51  ;;  %v1908_v6 = vadd.f32 %v3739_v28, %v1805_v52  ;;  %v1812_v8 = vld [vmem:[#allocation2 + $0x160] sm:$0xff] }
 0x249   : > { %2108 = vst [vmem:[%s3540_s24 + $0x6c] sm:$0xff] %v2493_v60  ;;  %2109 = vst [vmem:[%s3540_s24 + $0x74] sm:$0xff] %v2494_v61  ;;  %v2496_v10 = vpack.c.bf16 %v1905_v63, %v1904_v62  ;;  %v1909_v11 = vadd.f32 %v3741_v46, %v1806_v57  ;;  %v1910_v12 = vadd.f32 %v3743_v16, %v1807_v58 }
 0x24a   : > { %v1911_v13 = vadd.f32 %v3745_v32, %v1808_v59  ;;  %2110 = vst [vmem:[%s3540_s24 + $0x7c] sm:$0xff] %v2495_v3  ;;  %v2497_v18 = vpack.c.bf16 %v1906_v4, %v1906_v4  ;;  %v2498_v20 = vpack.c.bf16 %v1908_v6, %v1907_v5  ;;  %v1912_v21 = vadd.f32 %v3747_v33, %v1809_v0  ;;  %v1821_v27 = vld [vmem:[#allocation2 + $0x1a8] sm:$0xff] }
 0x24b   : > { %v1913_v22 = vadd.f32 %v3749_v34, %v1810_v1  ;;  %2111 = vst [vmem:[%s3540_s24 + $0x84] sm:$0xff] %v2496_v10  ;;  %v2499_v29 = vpack.c.bf16 %v1910_v12, %v1909_v11  ;;  %v1914_v30 = vadd.f32 %v3751_v35, %v1811_v7  ;;  %v1915_v31 = vadd.f32 %v3754_v37, %v1812_v8 }
 0x24c   : > { %v1916_v36 = vadd.f32 %v3737_v26, %v1813_v9  ;;  %2112 = vst [vmem:[%s3540_s24 + $0x8c] sm:$0xf] %v2497_v18  ;;  %2113 = vst [vmem:[%s3540_s24 + $0x90] sm:$0xff] %v2498_v20  ;;  %v2500_v39 = vpack.c.bf16 %v1912_v21, %v1911_v13  ;;  %v1917_v25 = vadd.f32 %v3739_v28, %v1814_v14 }
 0x24d   : > { %v1918_v2 = vadd.f32 %v3741_v46, %v1815_v15  ;;  %v1919_v40 = vadd.f32 %v3743_v16, %v1816_v17  ;;  %2114 = vst [vmem:[%s3540_s24 + $0x98] sm:$0xff] %v2499_v29  ;;  %v2501_v41 = vpack.c.bf16 %v1914_v30, %v1913_v22  ;;  %v2502_v26 = vpack.c.bf16 %v1915_v31, %v1915_v31 }
 0x24e   : > { %v1920_v42 = vadd.f32 %v3745_v32, %v1817_v23  ;;  %v1921_v43 = vadd.f32 %v3747_v33, %v1818_v24  ;;  %2115 = vst [vmem:[%s3540_s24 + $0xa0] sm:$0xff] %v2500_v39  ;;  %v2503_v44 = vpack.c.bf16 %v1917_v25, %v1916_v36  ;;  %v1922_v46 = vadd.f32 %v3749_v34, %v1819_v19 }
 0x24f   : > { %v2504_v28 = vpack.c.bf16 %v1919_v40, %v1918_v2  ;;  %v1923_v16 = vadd.f32 %v3751_v35, %v1820_v38  ;;  %2116 = vst [vmem:[%s3540_s24 + $0xa8] sm:$0xff] %v2501_v41  ;;  %2117 = vst [vmem:[%s3540_s24 + $0xb0] sm:$0xf] %v2502_v26  ;;  %v1924_v47 = vadd.f32 %v3754_v37, %v1821_v27 }
 0x250   : > { %v2505_v45 = vpack.c.bf16 %v1921_v43, %v1920_v42  ;;  %2118 = vst [vmem:[%s3540_s24 + $0xb4] sm:$0xff] %v2503_v44 }
 0x251   : > { %2119 = vst [vmem:[%s3540_s24 + $0xbc] sm:$0xff] %v2504_v28  ;;  %v2506_v48 = vpack.c.bf16 %v1923_v16, %v1922_v46  ;;  %v2507_v32 = vpack.c.bf16 %v1924_v47, %v1924_v47 }
 0x252   : > { %2120 = vst [vmem:[%s3540_s24 + $0xc4] sm:$0xff] %v2505_v45 }
 0x253   : > { %2121 = vst [vmem:[%s3540_s24 + $0xcc] sm:$0xff] %v2506_v48  ;;  %2122 = vst [vmem:[%s3540_s24 + $0xd4] sm:$0xf] %v2507_v32 }
 0x254 PF: > { %s3976_s18 = sld [smem:[#allocation15_spill]]  ;;  %s2140_s10 = sshll.u32 %s3540_s24, 4  ;;  %s3847_s10 = int_to_ptr.vmem [resolvable:$true] %s2140_s10 }
 0x255   : > { %s3977_s0 = sld [smem:[#allocation22_spill]]  ;;  %s2124_s6 = scalar_lea.sflag [#allocation5], %s3530_s8 }
 0x256   : > { %s3020_s3 = scalar_lea.vmem %s3847_s10, 3456  ;;  %p3978_p3 = scmp.ne.s32.totalorder %s3965_s7, 0 }
 0x257   : > { %p3021_p7 = scmp.ne.s32.totalorder %s3847_s10, %s3020_s3  ;;  %s3186_s1 = smov [#allocation9]  }
 0x258   : > { %s3024_s9 = sshll.u32 %s3186_s1, 4  ;;  %s3025_s9 = int_to_ptr.vmem [resolvable:$false] %s3024_s9 }
 0x259   : > { %p3022_p0 = pnand %p3021_p7, %p3978_p3  ;;  %s3026_s15 = scalar_lea.vmem %s3025_s9, 6912 }
 0x25a   : > { %s2508_s26 = smul.u32 576, %s3976_s18  ;;  %p3027_p1 = scmp.lt.s32.totalorder %s3847_s10, %s3025_s9 }
 0x25b   : > { %p3023_p5 = pneg %p3022_p0  ;;  %p3028_p12 = scmp.lt.s32.totalorder %s3026_s15, %s3020_s3 }
 0x25c   : > { %s3845_s4 = scalar_lea.hbm %s3977_s0, %s2508_s26 }
 0x25d   : > { %p3029_p6 = por %p3028_p12, %p3027_p1 }
 0x25f   : > { %p3030_p9 = pnand %p3029_p6, %p3023_p5 }
 0x261   : > { %3033 = shalt.err (!%p3030_p9)
}
 0x262   : > { %s3034_s11 = scalar_lea.hbm %s3845_s4, 3456  ;;  %s3038_s22 = scalar_lea.hbm %s3977_s0, 6912 }
 0x263   : > { %p3035_p11 = scmp.ne.s32.totalorder %s3845_s4, %s3034_s11  ;;  %p3039_p10 = scmp.lt.u32.totalorder %s3845_s4, %s3977_s0 }
 0x264   : > { %p3040_p4 = scmp.lt.u32.totalorder %s3038_s22, %s3034_s11  ;;  %p3042_p7 = scmp.lt.u32.totalorder %s3034_s11, %s3845_s4 }
 0x265   : > { %p3036_p2 = pnand %p3035_p11, %p3978_p3 }
 0x266   : > { %p3041_p8 = por %p3040_p4, %p3039_p10 }
 0x267   : > { %p3037_p13 = pneg %p3036_p2 }
 0x268   : > { %p3043_p0 = por %p3042_p7, %p3041_p8 }
 0x26a   : > { %p3044_p5 = pnand %p3043_p0, %p3037_p13 }
 0x26c   : > { %3047 = shalt.err (!%p3044_p5)
}
 0x26d   : > { %s3187_s27 = smov 576   ;;  %s3188_s5 = smov 1152  }
 0x26e   : > { %s3189_s3 = smov 36  }
 0x26f   : > { %2573 = dma.vmem_to_hbm [thread:$0]  (%p3978_p3), %s3847_s10, 3456, %s3845_s4, %s2124_s6, %s3187_s27, %s3188_s5, %s3189_s3  }
 0x270 PF: > { %p2590_p1 = scmp.ge.s32.totalorder %s3174_s25, 2  ;;  %s2155_s1 = sand.u32 1, %s3122_s12  }
 0x271   : > { %p3979_p12 = scmp.ne.s32.totalorder %s3969_s29, 0  ;;  %s2156_s9 = scalar_lea.sflag [#allocation5], %s2155_s1 }
 0x273   : > { %p2586_p6 = pnand %p2590_p1, %p3979_p12 }
 0x275   : > { %3117 = dma.done.wait (!%p2586_p6), %s2156_s9, 3456  }
 0x276   : > { %3119 = vsyncadd (!%p2586_p6), %s2156_s9, 4294963840  ;;  %s22_s25 = sadd.s32 1, %s3174_s25   ;;  %s3981_s7 = sld [smem:[#allocation16_spill]] }
 0x277   : > { %p3878_p9 = scmp.ge.s32.totalorder %s22_s25, 8   ;;  %s3982_s22 = sld [smem:[#allocation17_spill]] }
 0x278   : > { %s3983_s29 = sld [smem:[#allocation18_spill]]  ;;  %s3984_s24 = sld [smem:[#allocation19_spill]] }
 0x279   : > { %s3986_s12 = smov %s3126_s13  ;;  %s3987_s13 = smov %s3130_s14 }
 0x27a   : > { %s3988_s14 = smov %s3461_s21  ;;  %s3989_s15 = smov %s3138_s16 }
 0x27b   : > { %s3990_s16 = smov %s3142_s17  ;;  %s3991_s17 = smov %s3466_s23 }
 0x27c   : > { %s3992_s18 = smov %s3150_s19  ;;  %s3993_s19 = smov %s3154_s20 }
 0x27d   : > { %s3994_s20 = smov %s3358_s28  ;;  %s3995_s21 = smov %s3981_s7 }
 0x27e   : > { %s3996_s23 = smov %s3983_s29  ;;  %21 = sbr.rel (!%p3878_p9) target bundleno = 16 (0x10), region = 109 }
 0x285   :  { %2161 = vsyncpa [#allocation4], 1 }
 0x286   :  { %2163 = vsyncpa [#allocation4 + $0x1], 1 }
 0x287   :  { %2164 = vsyncpa [#allocation7], 1 }
 0x288   :  { %2166 = vsyncpa [#allocation7 + $0x1], 1 }
 0x289   :  { %2167 = vsyncpa [#allocation5], 1 }
 0x28a   :  { %2169 = vsyncpa [#allocation5 + $0x1], 1 }

</bundles_post_ra>
